<compile_context>
chip_gen: v5e
topology: v5e:2x2
jax: 0.10.0
libtpu: 0.0.40
codegen_flags: <defaults>
</compile_context>

<pallas_src>
import functools

import jax
import jax.numpy as jnp
from jax import lax
from jax.experimental import pallas as pl
from jax.experimental.pallas import tpu as pltpu

LN_EPS = 1e-5


def _layernorm_relu(h, gamma, beta):
    # Single-sweep statistics: E[h] and E[h^2] together, var = E[h^2] - mu^2.
    mu = jnp.mean(h, axis=-1, keepdims=True)
    ms = jnp.mean(h * h, axis=-1, keepdims=True)
    var = ms - mu * mu
    y = (h - mu) * lax.rsqrt(var + LN_EPS) * gamma + beta
    return jnp.maximum(y, 0.0)


def critic_kernel(s_ref, a_ref,
                  w1s_ref, w1a_ref, b1_ref, g1_ref, be1_ref,
                  w2_ref, b2_ref, g2_ref, be2_ref,
                  w3_ref, b3_ref,
                  out_ref, *, mm_dtype):
    def mm(x, w_ref):
        return jnp.dot(x.astype(mm_dtype), w_ref[...].astype(mm_dtype),
                       preferred_element_type=jnp.float32)

    # layer 1: (state @ W1_s + action @ W1_a) + b1 -> LayerNorm -> ReLU
    h = mm(s_ref[...], w1s_ref) + mm(a_ref[...], w1a_ref) + b1_ref[...]
    h = _layernorm_relu(h, g1_ref[...], be1_ref[...])

    # layer 2: Linear -> LayerNorm -> ReLU
    h = mm(h, w2_ref) + b2_ref[...]
    h = _layernorm_relu(h, g2_ref[...], be2_ref[...])

    # head (out_features = 1): VPU/XLU reduction instead of an N=1 MXU pass.
    q = jnp.sum(h * w3_ref[...], axis=-1, keepdims=True) + b3_ref[0, 0]
    out_ref[...] = q.astype(out_ref.dtype)


@functools.partial(jax.jit, static_argnames=("block_b", "mm_dtype"))
def critic_forward(state, action, params, block_b=128, mm_dtype=jnp.float32):
    B, S = state.shape
    _, A = action.shape
    H = params["w1_s"].shape[1]

    bb = min(block_b, B)                 # shrink tile for tiny batches
    grid = (pl.cdiv(B, bb),)

    def rep(shape):
        # full constant block, same for every batch tile (index_map always block 0)
        return pl.BlockSpec(shape, lambda i: (0,) * len(shape))

    kernel = functools.partial(critic_kernel, mm_dtype=mm_dtype)

    return pl.pallas_call(
        kernel,
        out_shape=jax.ShapeDtypeStruct((B, 1), jnp.float32),
        grid_spec=pltpu.PrefetchScalarGridSpec(
            num_scalar_prefetch=0,
            grid=grid,
            in_specs=[
                pl.BlockSpec((bb, S), lambda i: (i, 0)),            # state tile
                pl.BlockSpec((bb, A), lambda i: (i, 0)),            # action tile
                rep((S, H)), rep((A, H)),                           # W1_s, W1_a
                rep((1, H)), rep((1, H)), rep((1, H)),              # b1, g1, be1
                rep((H, H)),                                        # W2
                rep((1, H)), rep((1, H)), rep((1, H)),              # b2, g2, be2
                rep((1, H)),                                        # w3 row
                pl.BlockSpec(memory_space=pltpu.MemorySpace.SMEM),  # b3 scalar
            ],
            out_specs=pl.BlockSpec((bb, 1), lambda i: (i, 0)),
        ),
        compiler_params=pltpu.CompilerParams(
            dimension_semantics=("parallel",)),
    )(state, action,
      params["w1_s"], params["w1_a"], params["b1"], params["g1"], params["be1"],
      params["w2"], params["b2"], params["g2"], params["be2"],
      params["w3"], params["b3"])


def init_critic_params(key, state_dim, action_dim, hidden_dim=256):
    """Deterministic init mirroring the PyTorch module:
       orthogonal(gain=1) for hidden linears, orthogonal(gain=0.1) for the head,
       zero biases, LayerNorm gamma=1 / beta=0.  W1 is split into state/action parts."""
    d_in = state_dim + action_dim
    k1, k2, k3 = jax.random.split(key, 3)
    orth1 = jax.nn.initializers.orthogonal(scale=1.0)
    orth01 = jax.nn.initializers.orthogonal(scale=0.1)
    # torch weights are (out, in); store transposed as (in, out) so the kernel does x @ W.
    w1 = orth1(k1, (hidden_dim, d_in), jnp.float32).T          # (S+A, H)
    w2 = orth1(k2, (hidden_dim, hidden_dim), jnp.float32).T    # (H, H)
    w3 = orth01(k3, (1, hidden_dim), jnp.float32)              # (1, H) row (torch layout)
    return {
        "w1_s": w1[:state_dim], "w1_a": w1[state_dim:],
        "b1": jnp.zeros((1, hidden_dim), jnp.float32),
        "g1": jnp.ones((1, hidden_dim), jnp.float32),
        "be1": jnp.zeros((1, hidden_dim), jnp.float32),
        "w2": w2,
        "b2": jnp.zeros((1, hidden_dim), jnp.float32),
        "g2": jnp.ones((1, hidden_dim), jnp.float32),
        "be2": jnp.zeros((1, hidden_dim), jnp.float32),
        "w3": w3,
        "b3": jnp.zeros((1, 1), jnp.float32),
    }


def _ln_ref(h, g, b):
    mu = jnp.mean(h, axis=-1, keepdims=True)
    var = jnp.mean((h - mu) ** 2, axis=-1, keepdims=True)
    return (h - mu) / jnp.sqrt(var + LN_EPS) * g + b


def critic_reference(state, action, params):
    """Pure-JAX reference for correctness checking."""
    x = jnp.concatenate([state, action], axis=1)
    w1 = jnp.concatenate([params["w1_s"], params["w1_a"]], axis=0)
    h = jnp.maximum(_ln_ref(x @ w1 + params["b1"], params["g1"], params["be1"]), 0.0)
    h = jnp.maximum(_ln_ref(h @ params["w2"] + params["b2"], params["g2"], params["be2"]), 0.0)
    return h @ params["w3"].T + params["b3"]


if __name__ == "__main__":
    key = jax.random.PRNGKey(0)
    kp, ks, ka = jax.random.split(key, 3)

    batch = 256           # 2 grid steps at block_b=128 -> both v7x TCs get work
    state_dim = 12
    action_dim = 4
    hidden_dim = 256      # module default

    params = init_critic_params(kp, state_dim, action_dim, hidden_dim)
    state = jax.random.normal(ks, (batch, state_dim), jnp.float32)
    action = jax.random.normal(ka, (batch, action_dim), jnp.float32)

    q_ref = critic_reference(state, action, params)

    # f32 matmul operands (v5e-safe path, matches the pure-JAX reference tightly).
    q = jax.block_until_ready(critic_forward(state, action, params, block_b=128))
    assert q.shape == (batch, 1)
    assert jnp.allclose(q, q_ref, atol=2e-3, rtol=2e-3), float(jnp.abs(q - q_ref).max())

    # bf16 matmul operands (v6e / v7x fast path); LayerNorm/ReLU stay f32.
    q_bf16 = jax.block_until_ready(
        critic_forward(state, action, params, block_b=128, mm_dtype=jnp.bfloat16))
    assert q_bf16.shape == (batch, 1)
    assert jnp.allclose(q_bf16, q_ref, atol=5e-2, rtol=5e-2), float(jnp.abs(q_bf16 - q_ref).max())

    print("KERNEL_OK")
</pallas_src>

<mosaic_0001>
module attributes {stable_mosaic.version = 11 : i64} {
  func.func @critic_kernel(%arg0: i32, %arg1: memref<128x12xf32, #tpu.memory_space<vmem>>, %arg2: memref<128x4xf32, #tpu.memory_space<vmem>>, %arg3: memref<12x256xf32, #tpu.memory_space<vmem>>, %arg4: memref<4x256xf32, #tpu.memory_space<vmem>>, %arg5: memref<1x256xf32, #tpu.memory_space<vmem>>, %arg6: memref<1x256xf32, #tpu.memory_space<vmem>>, %arg7: memref<1x256xf32, #tpu.memory_space<vmem>>, %arg8: memref<256x256xf32, #tpu.memory_space<vmem>>, %arg9: memref<1x256xf32, #tpu.memory_space<vmem>>, %arg10: memref<1x256xf32, #tpu.memory_space<vmem>>, %arg11: memref<1x256xf32, #tpu.memory_space<vmem>>, %arg12: memref<1x256xf32, #tpu.memory_space<vmem>>, %arg13: memref<1x1xf32, #tpu.memory_space<smem>>, %arg14: memref<128x1xf32, #tpu.memory_space<vmem>>) attributes {dimension_semantics = [#tpu.dimension_semantics<parallel>], iteration_bounds = array<i64: 2>, scalar_prefetch = 0 : i64, scratch_operands = 0 : i64, tpu.core_type = #tpu.core_type<tc>, window_params = [{transform_indices = @transform_0, window_bounds = array<i64: 128, 12>}, {transform_indices = @transform_1, window_bounds = array<i64: 128, 4>}, {pipeline_mode = #tpu.pipeline_mode<synchronous>, transform_indices = @transform_2, window_bounds = array<i64: 12, 256>}, {pipeline_mode = #tpu.pipeline_mode<synchronous>, transform_indices = @transform_3, window_bounds = array<i64: 4, 256>}, {pipeline_mode = #tpu.pipeline_mode<synchronous>, transform_indices = @transform_4, window_bounds = array<i64: 1, 256>}, {pipeline_mode = #tpu.pipeline_mode<synchronous>, transform_indices = @transform_5, window_bounds = array<i64: 1, 256>}, {pipeline_mode = #tpu.pipeline_mode<synchronous>, transform_indices = @transform_6, window_bounds = array<i64: 1, 256>}, {pipeline_mode = #tpu.pipeline_mode<synchronous>, transform_indices = @transform_7, window_bounds = array<i64: 256, 256>}, {pipeline_mode = #tpu.pipeline_mode<synchronous>, transform_indices = @transform_8, window_bounds = array<i64: 1, 256>}, {pipeline_mode = #tpu.pipeline_mode<synchronous>, transform_indices = @transform_9, window_bounds = array<i64: 1, 256>}, {pipeline_mode = #tpu.pipeline_mode<synchronous>, transform_indices = @transform_10, window_bounds = array<i64: 1, 256>}, {pipeline_mode = #tpu.pipeline_mode<synchronous>, transform_indices = @transform_11, window_bounds = array<i64: 1, 256>}, {transform_indices = @transform_12, window_bounds = array<i64: 1, 1>}, {transform_indices = @transform_13, window_bounds = array<i64: 128, 1>}]} {
    %c0 = arith.constant 0 : index
    %c0_0 = arith.constant 0 : index
    %0 = vector.load %arg1[%c0, %c0_0] : memref<128x12xf32, #tpu.memory_space<vmem>>, vector<128x12xf32>
    %c0_1 = arith.constant 0 : index
    %c0_2 = arith.constant 0 : index
    %1 = vector.load %arg3[%c0_1, %c0_2] : memref<12x256xf32, #tpu.memory_space<vmem>>, vector<12x256xf32>
    %cst = arith.constant dense<0.000000e+00> : vector<128x256xf32>
    %2 = tpu.matmul %0, %1, %cst {dimension_numbers = #tpu.dot_dimension_numbers<[1], [0], [0], [1], [0, 0, 1, 1], [], []>} : vector<128x12xf32>, vector<12x256xf32>, vector<128x256xf32> -> vector<128x256xf32>
    %c0_3 = arith.constant 0 : index
    %c0_4 = arith.constant 0 : index
    %3 = vector.load %arg2[%c0_3, %c0_4] : memref<128x4xf32, #tpu.memory_space<vmem>>, vector<128x4xf32>
    %c0_5 = arith.constant 0 : index
    %c0_6 = arith.constant 0 : index
    %4 = vector.load %arg4[%c0_5, %c0_6] : memref<4x256xf32, #tpu.memory_space<vmem>>, vector<4x256xf32>
    %cst_7 = arith.constant dense<0.000000e+00> : vector<128x256xf32>
    %5 = tpu.matmul %3, %4, %cst_7 {dimension_numbers = #tpu.dot_dimension_numbers<[1], [0], [0], [1], [0, 0, 1, 1], [], []>} : vector<128x4xf32>, vector<4x256xf32>, vector<128x256xf32> -> vector<128x256xf32>
    %6 = arith.addf %2, %5 : vector<128x256xf32>
    %c0_8 = arith.constant 0 : index
    %c0_9 = arith.constant 0 : index
    %7 = vector.load %arg5[%c0_8, %c0_9] : memref<1x256xf32, #tpu.memory_space<vmem>>, vector<1x256xf32>
    %8 = vector.broadcast %7 : vector<1x256xf32> to vector<128x256xf32>
    %9 = arith.addf %6, %8 : vector<128x256xf32>
    %c0_10 = arith.constant 0 : index
    %c0_11 = arith.constant 0 : index
    %10 = vector.load %arg6[%c0_10, %c0_11] : memref<1x256xf32, #tpu.memory_space<vmem>>, vector<1x256xf32>
    %c0_12 = arith.constant 0 : index
    %c0_13 = arith.constant 0 : index
    %11 = vector.load %arg7[%c0_12, %c0_13] : memref<1x256xf32, #tpu.memory_space<vmem>>, vector<1x256xf32>
    %cst_14 = arith.constant dense<0.000000e+00> : vector<128xf32>
    %12 = vector.multi_reduction <add>, %9, %cst_14 [1] : vector<128x256xf32> to vector<128xf32>
    %13 = vector.shape_cast %12 : vector<128xf32> to vector<128x1xf32>
    %cst_15 = arith.constant 2.560000e+02 : f32
    %14 = vector.broadcast %cst_15 : f32 to vector<128x1xf32>
    %15 = arith.divf %13, %14 : vector<128x1xf32>
    %16 = arith.mulf %9, %9 : vector<128x256xf32>
    %cst_16 = arith.constant dense<0.000000e+00> : vector<128xf32>
    %17 = vector.multi_reduction <add>, %16, %cst_16 [1] : vector<128x256xf32> to vector<128xf32>
    %18 = vector.shape_cast %17 : vector<128xf32> to vector<128x1xf32>
    %cst_17 = arith.constant 2.560000e+02 : f32
    %19 = vector.broadcast %cst_17 : f32 to vector<128x1xf32>
    %20 = arith.divf %18, %19 : vector<128x1xf32>
    %21 = arith.mulf %15, %15 : vector<128x1xf32>
    %22 = arith.subf %20, %21 : vector<128x1xf32>
    %23 = vector.broadcast %15 : vector<128x1xf32> to vector<128x256xf32>
    %24 = arith.subf %9, %23 : vector<128x256xf32>
    %cst_18 = arith.constant 9.99999974E-6 : f32
    %25 = vector.broadcast %cst_18 : f32 to vector<128x1xf32>
    %26 = arith.addf %22, %25 : vector<128x1xf32>
    %27 = math.rsqrt %26 : vector<128x1xf32>
    %28 = vector.broadcast %27 : vector<128x1xf32> to vector<128x256xf32>
    %29 = arith.mulf %24, %28 : vector<128x256xf32>
    %30 = vector.broadcast %10 : vector<1x256xf32> to vector<128x256xf32>
    %31 = arith.mulf %29, %30 : vector<128x256xf32>
    %32 = vector.broadcast %11 : vector<1x256xf32> to vector<128x256xf32>
    %33 = arith.addf %31, %32 : vector<128x256xf32>
    %cst_19 = arith.constant 0.000000e+00 : f32
    %34 = vector.broadcast %cst_19 : f32 to vector<128x256xf32>
    %35 = arith.maximumf %33, %34 : vector<128x256xf32>
    %c0_20 = arith.constant 0 : index
    %c0_21 = arith.constant 0 : index
    %36 = vector.load %arg8[%c0_20, %c0_21] : memref<256x256xf32, #tpu.memory_space<vmem>>, vector<256x256xf32>
    %cst_22 = arith.constant dense<0.000000e+00> : vector<128x256xf32>
    %37 = tpu.matmul %35, %36, %cst_22 {dimension_numbers = #tpu.dot_dimension_numbers<[1], [0], [0], [1], [0, 0, 1, 1], [], []>} : vector<128x256xf32>, vector<256x256xf32>, vector<128x256xf32> -> vector<128x256xf32>
    %c0_23 = arith.constant 0 : index
    %c0_24 = arith.constant 0 : index
    %38 = vector.load %arg9[%c0_23, %c0_24] : memref<1x256xf32, #tpu.memory_space<vmem>>, vector<1x256xf32>
    %39 = vector.broadcast %38 : vector<1x256xf32> to vector<128x256xf32>
    %40 = arith.addf %37, %39 : vector<128x256xf32>
    %c0_25 = arith.constant 0 : index
    %c0_26 = arith.constant 0 : index
    %41 = vector.load %arg10[%c0_25, %c0_26] : memref<1x256xf32, #tpu.memory_space<vmem>>, vector<1x256xf32>
    %c0_27 = arith.constant 0 : index
    %c0_28 = arith.constant 0 : index
    %42 = vector.load %arg11[%c0_27, %c0_28] : memref<1x256xf32, #tpu.memory_space<vmem>>, vector<1x256xf32>
    %cst_29 = arith.constant dense<0.000000e+00> : vector<128xf32>
    %43 = vector.multi_reduction <add>, %40, %cst_29 [1] : vector<128x256xf32> to vector<128xf32>
    %44 = vector.shape_cast %43 : vector<128xf32> to vector<128x1xf32>
    %cst_30 = arith.constant 2.560000e+02 : f32
    %45 = vector.broadcast %cst_30 : f32 to vector<128x1xf32>
    %46 = arith.divf %44, %45 : vector<128x1xf32>
    %47 = arith.mulf %40, %40 : vector<128x256xf32>
    %cst_31 = arith.constant dense<0.000000e+00> : vector<128xf32>
    %48 = vector.multi_reduction <add>, %47, %cst_31 [1] : vector<128x256xf32> to vector<128xf32>
    %49 = vector.shape_cast %48 : vector<128xf32> to vector<128x1xf32>
    %cst_32 = arith.constant 2.560000e+02 : f32
    %50 = vector.broadcast %cst_32 : f32 to vector<128x1xf32>
    %51 = arith.divf %49, %50 : vector<128x1xf32>
    %52 = arith.mulf %46, %46 : vector<128x1xf32>
    %53 = arith.subf %51, %52 : vector<128x1xf32>
    %54 = vector.broadcast %46 : vector<128x1xf32> to vector<128x256xf32>
    %55 = arith.subf %40, %54 : vector<128x256xf32>
    %cst_33 = arith.constant 9.99999974E-6 : f32
    %56 = vector.broadcast %cst_33 : f32 to vector<128x1xf32>
    %57 = arith.addf %53, %56 : vector<128x1xf32>
    %58 = math.rsqrt %57 : vector<128x1xf32>
    %59 = vector.broadcast %58 : vector<128x1xf32> to vector<128x256xf32>
    %60 = arith.mulf %55, %59 : vector<128x256xf32>
    %61 = vector.broadcast %41 : vector<1x256xf32> to vector<128x256xf32>
    %62 = arith.mulf %60, %61 : vector<128x256xf32>
    %63 = vector.broadcast %42 : vector<1x256xf32> to vector<128x256xf32>
    %64 = arith.addf %62, %63 : vector<128x256xf32>
    %cst_34 = arith.constant 0.000000e+00 : f32
    %65 = vector.broadcast %cst_34 : f32 to vector<128x256xf32>
    %66 = arith.maximumf %64, %65 : vector<128x256xf32>
    %c0_35 = arith.constant 0 : index
    %c0_36 = arith.constant 0 : index
    %67 = vector.load %arg12[%c0_35, %c0_36] : memref<1x256xf32, #tpu.memory_space<vmem>>, vector<1x256xf32>
    %68 = vector.broadcast %67 : vector<1x256xf32> to vector<128x256xf32>
    %69 = arith.mulf %66, %68 : vector<128x256xf32>
    %cst_37 = arith.constant dense<0.000000e+00> : vector<128xf32>
    %70 = vector.multi_reduction <add>, %69, %cst_37 [1] : vector<128x256xf32> to vector<128xf32>
    %71 = vector.shape_cast %70 : vector<128xf32> to vector<128x1xf32>
    %c0_38 = arith.constant 0 : index
    %c0_39 = arith.constant 0 : index
    %72 = memref.load %arg13[%c0_38, %c0_39] : memref<1x1xf32, #tpu.memory_space<smem>>
    %73 = vector.broadcast %72 : f32 to vector<128x1xf32>
    %74 = arith.addf %71, %73 : vector<128x1xf32>
    %c0_40 = arith.constant 0 : index
    %c0_41 = arith.constant 0 : index
    %75 = vector.load %arg14[%c0_40, %c0_41] : memref<128x1xf32, #tpu.memory_space<vmem>>, vector<128x1xf32>
    tpu.vector_store %arg14[%c0_40, %c0_41], %74 {strides = array<i32>} : memref<128x1xf32, #tpu.memory_space<vmem>>, vector<128x1xf32>,
    return
  }
  func.func @transform_0(%arg0: i32) -> (i32, i32) {
    %c0_i32 = arith.constant 0 : i32
    %c0_i32_0 = arith.constant 0 : i32
    return %arg0, %c0_i32 : i32, i32
  }
  func.func @transform_1(%arg0: i32) -> (i32, i32) {
    %c0_i32 = arith.constant 0 : i32
    %c0_i32_0 = arith.constant 0 : i32
    return %arg0, %c0_i32 : i32, i32
  }
  func.func @transform_2(%arg0: i32) -> (i32, i32) {
    %c0_i32 = arith.constant 0 : i32
    %c0_i32_0 = arith.constant 0 : i32
    %c0_i32_1 = arith.constant 0 : i32
    return %c0_i32, %c0_i32_0 : i32, i32
  }
  func.func @transform_3(%arg0: i32) -> (i32, i32) {
    %c0_i32 = arith.constant 0 : i32
    %c0_i32_0 = arith.constant 0 : i32
    %c0_i32_1 = arith.constant 0 : i32
    return %c0_i32, %c0_i32_0 : i32, i32
  }
  func.func @transform_4(%arg0: i32) -> (i32, i32) {
    %c0_i32 = arith.constant 0 : i32
    %c0_i32_0 = arith.constant 0 : i32
    %c0_i32_1 = arith.constant 0 : i32
    return %c0_i32, %c0_i32_0 : i32, i32
  }
  func.func @transform_5(%arg0: i32) -> (i32, i32) {
    %c0_i32 = arith.constant 0 : i32
    %c0_i32_0 = arith.constant 0 : i32
    %c0_i32_1 = arith.constant 0 : i32
    return %c0_i32, %c0_i32_0 : i32, i32
  }
  func.func @transform_6(%arg0: i32) -> (i32, i32) {
    %c0_i32 = arith.constant 0 : i32
    %c0_i32_0 = arith.constant 0 : i32
    %c0_i32_1 = arith.constant 0 : i32
    return %c0_i32, %c0_i32_0 : i32, i32
  }
  func.func @transform_7(%arg0: i32) -> (i32, i32) {
    %c0_i32 = arith.constant 0 : i32
    %c0_i32_0 = arith.constant 0 : i32
    %c0_i32_1 = arith.constant 0 : i32
    return %c0_i32, %c0_i32_0 : i32, i32
  }
  func.func @transform_8(%arg0: i32) -> (i32, i32) {
    %c0_i32 = arith.constant 0 : i32
    %c0_i32_0 = arith.constant 0 : i32
    %c0_i32_1 = arith.constant 0 : i32
    return %c0_i32, %c0_i32_0 : i32, i32
  }
  func.func @transform_9(%arg0: i32) -> (i32, i32) {
    %c0_i32 = arith.constant 0 : i32
    %c0_i32_0 = arith.constant 0 : i32
    %c0_i32_1 = arith.constant 0 : i32
    return %c0_i32, %c0_i32_0 : i32, i32
  }
  func.func @transform_10(%arg0: i32) -> (i32, i32) {
    %c0_i32 = arith.constant 0 : i32
    %c0_i32_0 = arith.constant 0 : i32
    %c0_i32_1 = arith.constant 0 : i32
    return %c0_i32, %c0_i32_0 : i32, i32
  }
  func.func @transform_11(%arg0: i32) -> (i32, i32) {
    %c0_i32 = arith.constant 0 : i32
    %c0_i32_0 = arith.constant 0 : i32
    %c0_i32_1 = arith.constant 0 : i32
    return %c0_i32, %c0_i32_0 : i32, i32
  }
  func.func @transform_12(%arg0: i32) -> (i32, i32) {
    %c0_i32 = arith.constant 0 : i32
    %c0_i32_0 = arith.constant 0 : i32
    %c0_i32_1 = arith.constant 0 : i32
    return %c0_i32, %c0_i32_0 : i32, i32
  }
  func.func @transform_13(%arg0: i32) -> (i32, i32) {
    %c0_i32 = arith.constant 0 : i32
    %c0_i32_0 = arith.constant 0 : i32
    return %arg0, %c0_i32 : i32, i32
  }
}

</mosaic_0001>

<bundles_post_ra>
// kernel: critic_forward.1
= control target key start
LH: loop header
LB: loop body
LE: loop exit
PB: predicated region body
PF: predicated region fallthrough
CT: control target
= control target key end

     0   :  { %s4610_s0 = inlined_call_operand.vmem [shape: f32[256,12], index: 0, kind: input, shape index: {}]   ;;  %s4611_s1 = inlined_call_operand.vmem [shape: f32[256,4], index: 1, kind: input, shape index: {}]   ;;  %s4612_s2 = inlined_call_operand.vmem [shape: f32[12,256], index: 2, kind: input, shape index: {}]   ;;  %s4613_s3 = inlined_call_operand.hbm [shape: f32[4,256], index: 3, kind: input, shape index: {}]   ;;  %s4614_s4 = inlined_call_operand.hbm [shape: f32[1,256], index: 4, kind: input, shape index: {}]   ;;  %s4615_s5 = inlined_call_operand.vmem [shape: f32[1,256], index: 5, kind: input, shape index: {}]   ;;  %s4616_s6 = inlined_call_operand.vmem [shape: f32[1,256], index: 6, kind: input, shape index: {}]   ;;  %s4617_s7 = inlined_call_operand.vmem [shape: f32[256,256], index: 7, kind: input, shape index: {}]   ;;  %s4618_s8 = inlined_call_operand.hbm [shape: f32[1,256], index: 8, kind: input, shape index: {}]   ;;  %s4619_s9 = inlined_call_operand.hbm [shape: f32[1,256], index: 9, kind: input, shape index: {}]   ;;  %s4620_s10 = inlined_call_operand.hbm [shape: f32[1,256], index: 10, kind: input, shape index: {}]   ;;  %s4621_s11 = inlined_call_operand.vmem [shape: f32[1,256], index: 11, kind: input, shape index: {}]   ;;  %s4622_s12 = inlined_call_operand.<no memory space> [shape: f32[1,1], index: 12, kind: input, shape index: {}]   ;;  %s4623_s13 = inlined_call_operand.vmem [shape: f32[256,1], index: 13, kind: output, shape index: {}]  }
   0x1   :  { %4625 = sst [smem:[#allocation14_spill]] %s4613_s3 }
   0x2   :  { %18 = sst [smem:[#allocation2]] %s4622_s12 }
   0x3   :  { %19 = vsyncpa [#allocation4], 0 }
   0x4   :  { %20 = vsyncpa [#allocation6], 0 }
   0x5   :  { %21 = vsyncpa [#allocation9], 0  ;;  %s3110_s27 = smov 0  }
   0x6 LB: > { %s368_s30 = sshll.u32 %s4614_s4, 4  ;;  %s4624_s12 = sadd.s32 4294967295, %s3029_s27   ;;  %s3029_s27 = sphi %s3110_s27, %s27_s27   ;;  %s369_s30 = int_to_ptr.hbm [resolvable:$true] %s368_s30 }
   0x7   : > { %p2646_p0 = scmp.ge.s32.totalorder %s3029_s27, 1  ;;  %p341_p1 = scmp.lt.s32.totalorder %s3029_s27, 3 }
   0x8   : > { %p3123_p2 = scmp.eq.s32.totalorder %s4624_s12, 0  ;;  %s3031_s16 = smov [#allocation5]  }
   0x9   : > { %p3127_p3 = pnand %p2646_p0, %p341_p1  ;;  %s370_s17 = sshll.u32 %s3031_s16, 4  ;;  %s371_s17 = int_to_ptr.vmem [resolvable:$true] %s370_s17 }
   0xa   : > { %s401_s20 = sshll.u32 %s4619_s9, 4  ;;  %s4628_s3 = sld [smem:[#allocation14_spill]]  ;;  %s402_s20 = int_to_ptr.hbm [resolvable:$true] %s401_s20 }
   0xb   : > { %p2755_p4 = pneg %p3127_p3  ;;  %s3032_s25 = smov [#allocation8]  }
   0xc   : > { %s403_s26 = sshll.u32 %s3032_s25, 4  ;;  %s3033_s28 = smov [#allocation3]   ;;  %s404_s26 = int_to_ptr.vmem [resolvable:$true] %s403_s26 }
   0xd   : > { %p3141_p5 = pnand %p3123_p2, %p2755_p4  ;;  %s358_s29 = sshll.u32 %s3033_s28, 4  ;;  %s359_s29 = int_to_ptr.vmem [resolvable:$true] %s358_s29 }
   0xe   : > { %s389_s19 = sshll.u32 %s4618_s8, 4  ;;  %s413_s25 = sshll.u32 %s4620_s10, 4  ;;  %s390_s19 = int_to_ptr.hbm [resolvable:$true] %s389_s19  ;;  %s414_s25 = int_to_ptr.hbm [resolvable:$true] %s413_s25 }
   0xf   : > { %2761 = dma.hbm_to_vmem [thread:$0]  (!%p3141_p5), %s369_s30, 32, %s371_s17, [#allocation6]  }
  0x10   : > { %s356_s23 = sshll.u32 %s4628_s3, 4  ;;  %s3034_s12 = smov [#allocation7]   ;;  %s357_s23 = int_to_ptr.hbm [resolvable:$true] %s356_s23 }
  0x11   : > { %2767 = dma.hbm_to_vmem [thread:$0]  (!%p3141_p5), %s402_s20, 32, %s404_s26, [#allocation9]  }
  0x12   : > { %2758 = dma.hbm_to_vmem [thread:$0]  (!%p3141_p5), %s357_s23, 128, %s359_s29, [#allocation4]  }
  0x13   : > { %s391_s3 = sshll.u32 %s3034_s12, 4  ;;  %s3035_s30 = smov [#allocation10]   ;;  %s392_s3 = int_to_ptr.vmem [resolvable:$true] %s391_s3 }
  0x14   : > { %2764 = dma.hbm_to_vmem [thread:$0]  (!%p3141_p5), %s390_s19, 32, %s392_s3, [#allocation6]  }
  0x15   : > { %s415_s17 = sshll.u32 %s3035_s30, 4  ;;  %452 = sbr.rel (%p3127_p3) target bundleno = 871 (0x367), region = 72  ;;  %s416_s17 = int_to_ptr.vmem [resolvable:$true] %s415_s17 }
  0x16   : > { %2770 = dma.hbm_to_vmem [thread:$0]  (!%p3141_p5), %s414_s25, 32, %s416_s17, [#allocation9]  }
  0x1a   : > { %3016 = dma.done.wait (%p3123_p2), [#allocation4], 128  }
  0x1b   : > { %3018 = vsyncadd (%p3123_p2), [#allocation4], 4294967168 }
  0x1c   : > { %3020 = dma.done.wait (%p3123_p2), [#allocation6], 64  }
  0x1d   : > { %3022 = vsyncadd (%p3123_p2), [#allocation6], 4294967232 }
  0x1e   : > { %3024 = dma.done.wait (%p3123_p2), [#allocation9], 64  }
  0x1f   : > { %3026 = vsyncadd (%p3123_p2), [#allocation9], 4294967232  ;;  %s4630_s3 = sadd.s32 4294967295, %s3029_s27   ;;  %vm630_vm0 = vcmask 1043456   ;;  %v558_v0 = vld [vmem:[%s4612_s2 + $0x10] sm:$0xf] }
  0x20   : > { %s2659_s12 = sshll.u32 %s4630_s3, 4  ;;  %v559_v1 = vld [vmem:[%s4612_s2 + $0x18] sm:$0xf]  ;;  %v556_v2 = vld [vmem:[%s4612_s2] sm:$0xff]  ;;  %2699 = vmatpush.msk.msra.mxu2 %vm630_vm0, %v558_v0  ;;  %v557_v3 = vld [vmem:[%s4612_s2 + $0x8] sm:$0xff]  ;;  %vm765_vm1 = vcmask 97280  }
  0x21   : > { %p523_p6 = scmp.lt.s32.totalorder %s2659_s12, 31  ;;  %2716 = vmatpush.msk.msra.mxu3 %vm630_vm0, %v559_v1  ;;  %v576_v5 = vld [vmem:[#allocation3] sm:$0xff]  ;;  %vm581_vm2 = vcmask 31744   ;;  %v950_v39 = vld [vmem:[#allocation5] sm:$0x3]  ;;  %v1566_v50 = vld [vmem:[%s4617_s7 + $0xf8] sm:$0xff] }
  0x22   : > { %578 = vst [vmem:[#allocation1] ss:$2 sm:$0xff] %v576_v5  ;;  %835 = vmatpush.msra.mxu2 %v556_v2  ;;  %v3303_v41 = vperm.slane %v950_v39, 0  ;;  %v3305_v43 = vperm.slane %v950_v39, 1  ;;  %v1598_v51 = vld [vmem:[%s4617_s7 + $0x1f8] sm:$0xff]  ;;  %v1565_v63 = vld [vmem:[%s4617_s7 + $0xf0] sm:$0xff] }
  0x23   : > { %s4632_s12 = smov (!%p523_p6, %s2659_s12), 31  ;;  %900 = vmatpush.msra.mxu3 %v557_v3  ;;  %v1597_v0 = vld [vmem:[%s4617_s7 + $0x1f0] sm:$0xff]  ;;  %v1564_v1 = vld [vmem:[%s4617_s7 + $0xe8] sm:$0xff]  ;;  %s2491_s25 = sld [smem:[#allocation2]] }
  0x24   : > { %s3177_s15 = sshll.u32 %s4632_s12, 3  ;;  %1735 = vmatpush.msrb.mxu2 %v1566_v50  ;;  %v1596_v2 = vld [vmem:[%s4617_s7 + $0x1e8] sm:$0xff] }
  0x25   : > { %s3183_s24 = scalar_lea.vmem %s4610_s0, %s3177_s15  ;;  %s3206_s30 = scalar_lea.vmem %s4611_s1, %s3177_s15  ;;  %1800 = vmatpush.msrb.mxu3 %v1598_v51 }
  0x26   : > { %v540_v4 = vld [vmem:[%s3183_s24] sm:$0xff]  ;;  %v541_v7 = vld [vmem:[%s3183_s24 + $0x8] sm:$0xff]  ;;  %v542_v11 = vld [vmem:[%s3183_s24 + $0x10] sm:$0xff]  ;;  %1736 = vmatpush.msrb.mxu2 %v1564_v1  ;;  %s4551_s3 = scalar_lea.vmem %s4623_s13, %s3177_s15 }
  0x27   : > { %2700 = vmatmul.msk.f32.vlgmr.msra.gmra.mxu2 %vm765_vm1, %v540_v4  ;;  %2717 = vmatmul.msk.f32.vlgmr.msra.gmra.mxu3 %vm765_vm1, %v540_v4  ;;  %v560_v6 = vld [vmem:[%s3206_s30] sm:$0xff]  ;;  %v561_v10 = vld [vmem:[%s3206_s30 + $0x8] sm:$0xff]  ;;  %v562_v12 = vld [vmem:[%s3206_s30 + $0x10] sm:$0xff] }
  0x28   : > { %v543_v13 = vld [vmem:[%s3183_s24 + $0x18] sm:$0xff]  ;;  %v544_v15 = vld [vmem:[%s3183_s24 + $0x20] sm:$0xff]  ;;  %v545_v17 = vld [vmem:[%s3183_s24 + $0x28] sm:$0xff]  ;;  %1801 = vmatpush.msrb.mxu3 %v1596_v2 }
  0x29   : > { %v579_v8 = vld.sshfl [vmem:[#allocation1] sm:$0xff pattern:$0x75316420]  ;;  %v580_v9 = vld.sshfl [vmem:[#allocation1 + $0x8] sm:$0xff pattern:$0x75316420] }
  0x2a   : > { %2665 = vmatpush.msk.msra.mxu0 %vm630_vm0, %v579_v8  ;;  %2682 = vmatpush.msk.msra.mxu1 %vm630_vm0, %v580_v9  ;;  %v563_v14 = vld [vmem:[%s3206_s30 + $0x18] sm:$0xff]  ;;  %v564_v16 = vld [vmem:[%s3206_s30 + $0x20] sm:$0xff]  ;;  %v565_v18 = vld [vmem:[%s3206_s30 + $0x28] sm:$0xff] }
  0x2b   : > { %2666 = vmatmul.msk.f32.vlgmr.msra.gmra.mxu0 %vm581_vm2, %v560_v6  ;;  %2683 = vmatmul.msk.f32.vlgmr.msra.gmra.mxu1 %vm581_vm2, %v560_v6  ;;  %v546_v19 = vld [vmem:[%s3183_s24 + $0x30] sm:$0xff]  ;;  %v547_v21 = vld [vmem:[%s3183_s24 + $0x38] sm:$0xff]  ;;  %v548_v23 = vld [vmem:[%s3183_s24 + $0x40] sm:$0xff] }
  0x2c   : > { %v566_v20 = vld [vmem:[%s3206_s30 + $0x30] sm:$0xff]  ;;  %v567_v22 = vld [vmem:[%s3206_s30 + $0x38] sm:$0xff]  ;;  %v568_v24 = vld [vmem:[%s3206_s30 + $0x40] sm:$0xff]  ;;  %1605 = vmatpush.msrb.mxu0 %v1565_v63  ;;  %1670 = vmatpush.msrb.mxu1 %v1597_v0 }
  0x2d   : > { %v549_v25 = vld [vmem:[%s3183_s24 + $0x48] sm:$0xff]  ;;  %v550_v27 = vld [vmem:[%s3183_s24 + $0x50] sm:$0xff]  ;;  %v551_v29 = vld [vmem:[%s3183_s24 + $0x58] sm:$0xff] }
  0x2e   : > { %v569_v26 = vld [vmem:[%s3206_s30 + $0x48] sm:$0xff]  ;;  %v570_v28 = vld [vmem:[%s3206_s30 + $0x50] sm:$0xff]  ;;  %v571_v30 = vld [vmem:[%s3206_s30 + $0x58] sm:$0xff] }
  0x2f   : > { %2701 = vmatmul.msk.f32.gmra.mxu2 %vm765_vm1, %v541_v7  ;;  %2718 = vmatmul.msk.f32.gmra.mxu3 %vm765_vm1, %v541_v7  ;;  %v552_v31 = vld [vmem:[%s3183_s24 + $0x60] sm:$0xff]  ;;  %v553_v33 = vld [vmem:[%s3183_s24 + $0x68] sm:$0xff]  ;;  %v554_v35 = vld [vmem:[%s3183_s24 + $0x70] sm:$0xff] }
  0x30   : > { %v572_v32 = vld [vmem:[%s3206_s30 + $0x60] sm:$0xff]  ;;  %v573_v34 = vld [vmem:[%s3206_s30 + $0x68] sm:$0xff]  ;;  %v574_v36 = vld [vmem:[%s3206_s30 + $0x70] sm:$0xff] }
  0x31   : > { %v555_v37 = vld [vmem:[%s3183_s24 + $0x78] sm:$0xff] }
  0x32   : > { %v575_v38 = vld [vmem:[%s3206_s30 + $0x78] sm:$0xff] }
  0x33   : > { %2667 = vmatmul.msk.f32.gmra.mxu0 %vm581_vm2, %v561_v10  ;;  %2684 = vmatmul.msk.f32.gmra.mxu1 %vm581_vm2, %v561_v10 }
  0x37   : > { %2702 = vmatmul.msk.f32.gmra.mxu2 %vm765_vm1, %v542_v11  ;;  %2719 = vmatmul.msk.f32.gmra.mxu3 %vm765_vm1, %v542_v11 }
  0x3b   : > { %2668 = vmatmul.msk.f32.gmra.mxu0 %vm581_vm2, %v562_v12  ;;  %2685 = vmatmul.msk.f32.gmra.mxu1 %vm581_vm2, %v562_v12 }
  0x3f   : > { %2703 = vmatmul.msk.f32.gmra.mxu2 %vm765_vm1, %v543_v13  ;;  %2720 = vmatmul.msk.f32.gmra.mxu3 %vm765_vm1, %v543_v13 }
  0x43   : > { %2669 = vmatmul.msk.f32.gmra.mxu0 %vm581_vm2, %v563_v14  ;;  %2686 = vmatmul.msk.f32.gmra.mxu1 %vm581_vm2, %v563_v14 }
  0x47   : > { %2704 = vmatmul.msk.f32.gmra.mxu2 %vm765_vm1, %v544_v15  ;;  %2721 = vmatmul.msk.f32.gmra.mxu3 %vm765_vm1, %v544_v15  ;;  %v1563_v15 = vld [vmem:[%s4617_s7 + $0xe0] sm:$0xff] }
  0x48   : > { %1606 = vmatpush.msrb.mxu0 %v1563_v15 }
  0x4b   : > { %2670 = vmatmul.msk.f32.gmra.mxu0 %vm581_vm2, %v564_v16  ;;  %2687 = vmatmul.msk.f32.gmra.mxu1 %vm581_vm2, %v564_v16  ;;  %v1595_v16 = vld [vmem:[%s4617_s7 + $0x1e0] sm:$0xff] }
  0x4c   : > { %1671 = vmatpush.msrb.mxu1 %v1595_v16 }
  0x4f   : > { %2705 = vmatmul.msk.f32.gmra.mxu2 %vm765_vm1, %v545_v17  ;;  %2722 = vmatmul.msk.f32.gmra.mxu3 %vm765_vm1, %v545_v17  ;;  %v1562_v17 = vld [vmem:[%s4617_s7 + $0xd8] sm:$0xff] }
  0x50   : > { %1737 = vmatpush.msrb.mxu2 %v1562_v17 }
  0x53   : > { %2671 = vmatmul.msk.f32.gmra.mxu0 %vm581_vm2, %v565_v18  ;;  %2688 = vmatmul.msk.f32.gmra.mxu1 %vm581_vm2, %v565_v18  ;;  %v1594_v18 = vld [vmem:[%s4617_s7 + $0x1d8] sm:$0xff] }
  0x54   : > { %1802 = vmatpush.msrb.mxu3 %v1594_v18 }
  0x57   : > { %2706 = vmatmul.msk.f32.gmra.mxu2 %vm765_vm1, %v546_v19  ;;  %2723 = vmatmul.msk.f32.gmra.mxu3 %vm765_vm1, %v546_v19 }
  0x5b   : > { %2672 = vmatmul.msk.f32.gmra.mxu0 %vm581_vm2, %v566_v20  ;;  %2689 = vmatmul.msk.f32.gmra.mxu1 %vm581_vm2, %v566_v20 }
  0x5f   : > { %2707 = vmatmul.msk.f32.gmra.mxu2 %vm765_vm1, %v547_v21  ;;  %2724 = vmatmul.msk.f32.gmra.mxu3 %vm765_vm1, %v547_v21 }
  0x63   : > { %2673 = vmatmul.msk.f32.gmra.mxu0 %vm581_vm2, %v567_v22  ;;  %2690 = vmatmul.msk.f32.gmra.mxu1 %vm581_vm2, %v567_v22 }
  0x67   : > { %2708 = vmatmul.msk.f32.gmra.mxu2 %vm765_vm1, %v548_v23  ;;  %2725 = vmatmul.msk.f32.gmra.mxu3 %vm765_vm1, %v548_v23 }
  0x6b   : > { %2674 = vmatmul.msk.f32.gmra.mxu0 %vm581_vm2, %v568_v24  ;;  %2691 = vmatmul.msk.f32.gmra.mxu1 %vm581_vm2, %v568_v24 }
  0x6f   : > { %2709 = vmatmul.msk.f32.gmra.mxu2 %vm765_vm1, %v549_v25  ;;  %2726 = vmatmul.msk.f32.gmra.mxu3 %vm765_vm1, %v549_v25 }
  0x73   : > { %2675 = vmatmul.msk.f32.gmra.mxu0 %vm581_vm2, %v569_v26  ;;  %2692 = vmatmul.msk.f32.gmra.mxu1 %vm581_vm2, %v569_v26 }
  0x77   : > { %2710 = vmatmul.msk.f32.gmra.mxu2 %vm765_vm1, %v550_v27  ;;  %2727 = vmatmul.msk.f32.gmra.mxu3 %vm765_vm1, %v550_v27 }
  0x7b   : > { %2676 = vmatmul.msk.f32.gmra.mxu0 %vm581_vm2, %v570_v28  ;;  %2693 = vmatmul.msk.f32.gmra.mxu1 %vm581_vm2, %v570_v28 }
  0x7f   : > { %2711 = vmatmul.msk.f32.gmra.mxu2 %vm765_vm1, %v551_v29  ;;  %2728 = vmatmul.msk.f32.gmra.mxu3 %vm765_vm1, %v551_v29 }
  0x83   : > { %2677 = vmatmul.msk.f32.gmra.mxu0 %vm581_vm2, %v571_v30  ;;  %2694 = vmatmul.msk.f32.gmra.mxu1 %vm581_vm2, %v571_v30 }
  0x87   : > { %2712 = vmatmul.msk.f32.gmra.mxu2 %vm765_vm1, %v552_v31  ;;  %2729 = vmatmul.msk.f32.gmra.mxu3 %vm765_vm1, %v552_v31  ;;  %v1561_v31 = vld [vmem:[%s4617_s7 + $0xd0] sm:$0xff] }
  0x88   : > { %1607 = vmatpush.msrb.mxu0 %v1561_v31 }
  0x8b   : > { %2678 = vmatmul.msk.f32.gmra.mxu0 %vm581_vm2, %v572_v32  ;;  %2695 = vmatmul.msk.f32.gmra.mxu1 %vm581_vm2, %v572_v32  ;;  %v1593_v32 = vld [vmem:[%s4617_s7 + $0x1d0] sm:$0xff] }
  0x8c   : > { %1672 = vmatpush.msrb.mxu1 %v1593_v32 }
  0x8f   : > { %2713 = vmatmul.msk.f32.gmra.mxu2 %vm765_vm1, %v553_v33  ;;  %2730 = vmatmul.msk.f32.gmra.mxu3 %vm765_vm1, %v553_v33  ;;  %v1560_v33 = vld [vmem:[%s4617_s7 + $0xc8] sm:$0xff] }
  0x90   : > { %1738 = vmatpush.msrb.mxu2 %v1560_v33 }
  0x93   : > { %2679 = vmatmul.msk.f32.gmra.mxu0 %vm581_vm2, %v573_v34  ;;  %2696 = vmatmul.msk.f32.gmra.mxu1 %vm581_vm2, %v573_v34 }
  0x97   : > { %2714 = vmatmul.msk.f32.gmra.mxu2 %vm765_vm1, %v554_v35  ;;  %2731 = vmatmul.msk.f32.gmra.mxu3 %vm765_vm1, %v554_v35  ;;  %v1592_v35 = vld [vmem:[%s4617_s7 + $0x1c8] sm:$0xff] }
  0x98   : > { %1803 = vmatpush.msrb.mxu3 %v1592_v35 }
  0x9b   : > { %2680 = vmatmul.msk.f32.gmra.mxu0 %vm581_vm2, %v574_v36  ;;  %2697 = vmatmul.msk.f32.gmra.mxu1 %vm581_vm2, %v574_v36 }
  0x9f   : > { %2715 = vmatmul.msk.f32.gmra.mxu2 %vm765_vm1, %v555_v37  ;;  %2732 = vmatmul.msk.f32.gmra.mxu3 %vm765_vm1, %v555_v37 }
  0xa3   : > { %2681 = vmatmul.msk.f32.gmra.mxu0 %vm581_vm2, %v575_v38  ;;  %2698 = vmatmul.msk.f32.gmra.mxu1 %vm581_vm2, %v575_v38 }
  0xa8   : > { %v652_v44 = vpop.f32.mrf.mxu0  ;;  %v717_v45 = vpop.f32.mrf.mxu1 }
  0xaa   : > { %v837_v40 = vpop.f32.mrf.mxu2  ;;  %v902_v42 = vpop.f32.mrf.mxu3 }
  0xab   : > { %v838_v46 = vadd.f32 %v837_v40, %v652_v44  ;;  %v903_v47 = vadd.f32 %v902_v42, %v717_v45 }
  0xad   : > { %v3308_v48 = vadd.f32 %v3303_v41, %v838_v46  ;;  %v3311_v49 = vadd.f32 %v3305_v43, %v903_v47 }
  0xaf   : > { %v990_v52 = vadd.f32 %v3311_v49, %v3308_v48  ;;  %v1061_v59 = vmul.f32 %v3308_v48, %v3308_v48  ;;  %v1062_v60 = vmul.f32 %v3311_v49, %v3311_v49 }
  0xb0   : > { %v655_v55 = vpop.f32.mrf.mxu0  ;;  %v720_v56 = vpop.f32.mrf.mxu1 }
  0xb1   : > { %991 = vadd.xlane.f32.xlu0 %v990_v52  ;;  %v1093_v4 = vadd.f32 %v1062_v60, %v1061_v59  ;;  %v1559_v52 = vld [vmem:[%s4617_s7 + $0xc0] sm:$0xff] }
  0xb2   : > { %v840_v53 = vpop.f32.mrf.mxu2  ;;  %v905_v54 = vpop.f32.mrf.mxu3  ;;  %1608 = vmatpush.msrb.mxu0 %v1559_v52 }
  0xb3   : > { %v841_v57 = vadd.f32 %v840_v53, %v655_v55  ;;  %v906_v58 = vadd.f32 %v905_v54, %v720_v56  ;;  %v1591_v53 = vld [vmem:[%s4617_s7 + $0x1c0] sm:$0xff]  ;;  %v1558_v54 = vld [vmem:[%s4617_s7 + $0xb8] sm:$0xff] }
  0xb4   : > { %1673 = vmatpush.msrb.mxu1 %v1591_v53  ;;  %v1590_v55 = vld [vmem:[%s4617_s7 + $0x1b8] sm:$0xff]  ;;  %1739 = vmatpush.msrb.mxu2 %v1558_v54 }
  0xb5   : > { %v3326_v61 = vadd.f32 %v3303_v41, %v841_v57  ;;  %v3329_v62 = vadd.f32 %v3305_v43, %v906_v58  ;;  %1804 = vmatpush.msrb.mxu3 %v1590_v55 }
  0xb7   : > { %v993_v3 = vadd.f32 %v3329_v62, %v3326_v61  ;;  %v1063_v11 = vmul.f32 %v3326_v61, %v3326_v61  ;;  %v1064_v12 = vmul.f32 %v3329_v62, %v3329_v62 }
  0xb8   : > { %v658_v7 = vpop.f32.mrf.mxu0  ;;  %v723_v8 = vpop.f32.mrf.mxu1 }
  0xb9   : > { %994 = vadd.xlane.f32.xlu1 %v993_v3  ;;  %1094 = vadd.xlane.f32.xlu0 %v1093_v4  ;;  %v1096_v20 = vadd.f32 %v1064_v12, %v1063_v11 }
  0xba   : > { %v843_v5 = vpop.f32.mrf.mxu2  ;;  %v908_v6 = vpop.f32.mrf.mxu3 }
  0xbb   : > { %v844_v9 = vadd.f32 %v843_v5, %v658_v7  ;;  %v909_v10 = vadd.f32 %v908_v6, %v723_v8  ;;  %v1557_v6 = vld [vmem:[%s4617_s7 + $0xb0] sm:$0xff]  ;;  %v1556_v8 = vld [vmem:[%s4617_s7 + $0xa8] sm:$0xff] }
  0xbc   : > { %v1589_v7 = vld [vmem:[%s4617_s7 + $0x1b0] sm:$0xff]  ;;  %1609 = vmatpush.msrb.mxu0 %v1557_v6  ;;  %1740 = vmatpush.msrb.mxu2 %v1556_v8  ;;  %v1550_v6 = vld [vmem:[%s4617_s7 + $0x78] sm:$0xff] }
  0xbd   : > { %v3350_v13 = vadd.f32 %v3303_v41, %v844_v9  ;;  %v3353_v14 = vadd.f32 %v3305_v43, %v909_v10  ;;  %1674 = vmatpush.msrb.mxu1 %v1589_v7  ;;  %v1588_v9 = vld [vmem:[%s4617_s7 + $0x1a8] sm:$0xff]  ;;  %v1582_v7 = vld [vmem:[%s4617_s7 + $0x178] sm:$0xff] }
  0xbe   : > { %1805 = vmatpush.msrb.mxu3 %v1588_v9 }
  0xbf   : > { %v996_v19 = vadd.f32 %v3353_v14, %v3350_v13  ;;  %v1065_v25 = vmul.f32 %v3350_v13, %v3350_v13  ;;  %v1066_v26 = vmul.f32 %v3353_v14, %v3353_v14 }
  0xc0   : > { %v661_v23 = vpop.f32.mrf.mxu0  ;;  %v726_v24 = vpop.f32.mrf.mxu1 }
  0xc1   : > { %997 = vadd.xlane.f32.xlu2 %v996_v19  ;;  %1097 = vadd.xlane.f32.xlu1 %v1096_v20  ;;  %v1099_v34 = vadd.f32 %v1066_v26, %v1065_v25  ;;  %v1587_v25 = vld [vmem:[%s4617_s7 + $0x1a0] sm:$0xff]  ;;  %v1554_v26 = vld [vmem:[%s4617_s7 + $0x98] sm:$0xff] }
  0xc2   : > { %v846_v21 = vpop.f32.mrf.mxu2  ;;  %v911_v22 = vpop.f32.mrf.mxu3  ;;  %1675 = vmatpush.msrb.mxu1 %v1587_v25  ;;  %1741 = vmatpush.msrb.mxu2 %v1554_v26  ;;  %v1581_v25 = vld [vmem:[%s4617_s7 + $0x170] sm:$0xff]  ;;  %v1548_v26 = vld [vmem:[%s4617_s7 + $0x68] sm:$0xff] }
  0xc3   : > { %v847_v27 = vadd.f32 %v846_v21, %v661_v23  ;;  %v912_v28 = vadd.f32 %v911_v22, %v726_v24  ;;  %v1555_v24 = vld [vmem:[%s4617_s7 + $0xa0] sm:$0xff] }
  0xc4   : > { %1610 = vmatpush.msrb.mxu0 %v1555_v24  ;;  %v1549_v24 = vld [vmem:[%s4617_s7 + $0x70] sm:$0xff] }
  0xc5   : > { %v3374_v29 = vadd.f32 %v3303_v41, %v847_v27  ;;  %v3377_v30 = vadd.f32 %v3305_v43, %v912_v28  ;;  %v1586_v27 = vld [vmem:[%s4617_s7 + $0x198] sm:$0xff] }
  0xc6   : > { %1806 = vmatpush.msrb.mxu3 %v1586_v27  ;;  %v1580_v27 = vld [vmem:[%s4617_s7 + $0x168] sm:$0xff] }
  0xc7   : > { %v999_v36 = vadd.f32 %v3377_v30, %v3374_v29  ;;  %v1067_v37 = vmul.f32 %v3374_v29, %v3374_v29  ;;  %v1068_v38 = vmul.f32 %v3377_v30, %v3377_v30 }
  0xc8   : > { %v664_v44 = vpop.f32.mrf.mxu0  ;;  %v729_v45 = vpop.f32.mrf.mxu1 }
  0xc9   : > { %1100 = vadd.xlane.f32.xlu2 %v1099_v34  ;;  %1000 = vadd.xlane.f32.xlu0 %v999_v36  ;;  %v1102_v42 = vadd.f32 %v1068_v38, %v1067_v37 }
  0xca   : > { %v849_v39 = vpop.f32.mrf.mxu2  ;;  %v914_v40 = vpop.f32.mrf.mxu3 }
  0xcb   : > { %v850_v46 = vadd.f32 %v849_v39, %v664_v44  ;;  %v915_v47 = vadd.f32 %v914_v40, %v729_v45  ;;  %1103 = vadd.xlane.f32.xlu1 %v1102_v42  ;;  %v1553_v44 = vld [vmem:[%s4617_s7 + $0x90] sm:$0xff] }
  0xcc   : > { %v1585_v45 = vld [vmem:[%s4617_s7 + $0x190] sm:$0xff]  ;;  %1611 = vmatpush.msrb.mxu0 %v1553_v44 }
  0xcd   : > { %v3398_v50 = vadd.f32 %v3303_v41, %v850_v46  ;;  %v3401_v51 = vadd.f32 %v3305_v43, %v915_v47  ;;  %v1552_v46 = vld [vmem:[%s4617_s7 + $0x88] sm:$0xff]  ;;  %1676 = vmatpush.msrb.mxu1 %v1585_v45 }
  0xce   : > { %v1584_v47 = vld [vmem:[%s4617_s7 + $0x188] sm:$0xff]  ;;  %1742 = vmatpush.msrb.mxu2 %v1552_v46  ;;  %v1547_v46 = vld [vmem:[%s4617_s7 + $0x60] sm:$0xff] }
  0xcf   : > { %v1002_v56 = vadd.f32 %v3401_v51, %v3398_v50  ;;  %v1069_v57 = vmul.f32 %v3398_v50, %v3398_v50  ;;  %v1070_v58 = vmul.f32 %v3401_v51, %v3401_v51  ;;  %1807 = vmatpush.msrb.mxu3 %v1584_v47  ;;  %v1579_v47 = vld [vmem:[%s4617_s7 + $0x160] sm:$0xff] }
  0xd0   : > { %v667_v0 = vpop.f32.mrf.mxu0  ;;  %v732_v1 = vpop.f32.mrf.mxu1  ;;  %1743 = vmatpush.msrb.mxu2 %v1550_v6 }
  0xd1   : > { %1003 = vadd.xlane.f32.xlu2 %v1002_v56  ;;  %v1105_v63 = vadd.f32 %v1070_v58, %v1069_v57  ;;  %1808 = vmatpush.msrb.mxu3 %v1582_v7 }
  0xd2   : > { %v852_v59 = vpop.f32.mrf.mxu2  ;;  %v917_v60 = vpop.f32.mrf.mxu3  ;;  %1744 = vmatpush.msrb.mxu2 %v1548_v26 }
  0xd3   : > { %v853_v2 = vadd.f32 %v852_v59, %v667_v0  ;;  %v918_v3 = vadd.f32 %v917_v60, %v732_v1  ;;  %1106 = vadd.xlane.f32.xlu0 %v1105_v63  ;;  %1809 = vmatpush.msrb.mxu3 %v1580_v27 }
  0xd5   : > { %v3422_v4 = vadd.f32 %v3303_v41, %v853_v2  ;;  %v3425_v5 = vadd.f32 %v3305_v43, %v918_v3  ;;  %v1551_v2 = vld [vmem:[%s4617_s7 + $0x80] sm:$0xff] }
  0xd6   : > { %v1583_v3 = vld [vmem:[%s4617_s7 + $0x180] sm:$0xff]  ;;  %1612 = vmatpush.msrb.mxu0 %v1551_v2 }
  0xd7   : > { %v1005_v10 = vadd.f32 %v3425_v5, %v3422_v4  ;;  %v1071_v11 = vmul.f32 %v3422_v4, %v3422_v4  ;;  %v1072_v12 = vmul.f32 %v3425_v5, %v3425_v5  ;;  %1677 = vmatpush.msrb.mxu1 %v1583_v3 }
  0xd8   : > { %v670_v18 = vpop.f32.mrf.mxu0  ;;  %v735_v19 = vpop.f32.mrf.mxu1  ;;  %1613 = vmatpush.msrb.mxu0 %v1549_v24  ;;  %v1543_v24 = vld [vmem:[%s4617_s7 + $0x40] sm:$0xff] }
  0xd9   : > { %1006 = vadd.xlane.f32.xlu1 %v1005_v10  ;;  %v1108_v17 = vadd.f32 %v1072_v12, %v1071_v11  ;;  %1678 = vmatpush.msrb.mxu1 %v1581_v25 }
  0xda   : > { %v855_v15 = vpop.f32.mrf.mxu2  ;;  %v920_v16 = vpop.f32.mrf.mxu3  ;;  %1614 = vmatpush.msrb.mxu0 %v1547_v46 }
  0xdb   : > { %v856_v20 = vadd.f32 %v855_v15, %v670_v18  ;;  %v921_v21 = vadd.f32 %v920_v16, %v735_v19  ;;  %1109 = vadd.xlane.f32.xlu2 %v1108_v17  ;;  %1679 = vmatpush.msrb.mxu1 %v1579_v47 }
  0xdd   : > { %v3446_v22 = vadd.f32 %v3303_v41, %v856_v20  ;;  %v3449_v23 = vadd.f32 %v3305_v43, %v921_v21 }
  0xdf   : > { %v1008_v28 = vadd.f32 %v3449_v23, %v3446_v22  ;;  %v1073_v31 = vmul.f32 %v3446_v22, %v3446_v22  ;;  %v1074_v32 = vmul.f32 %v3449_v23, %v3449_v23 }
  0xe0   : > { %v673_v36 = vpop.f32.mrf.mxu0  ;;  %v738_v37 = vpop.f32.mrf.mxu1 }
  0xe1   : > { %1009 = vadd.xlane.f32.xlu0 %v1008_v28  ;;  %v1111_v35 = vadd.f32 %v1074_v32, %v1073_v31 }
  0xe2   : > { %v858_v33 = vpop.f32.mrf.mxu2  ;;  %v923_v34 = vpop.f32.mrf.mxu3 }
  0xe3   : > { %v859_v38 = vadd.f32 %v858_v33, %v673_v36  ;;  %v924_v39 = vadd.f32 %v923_v34, %v738_v37  ;;  %1112 = vadd.xlane.f32.xlu1 %v1111_v35 }
  0xe5   : > { %v3470_v40 = vadd.f32 %v3303_v41, %v859_v38  ;;  %v3473_v42 = vadd.f32 %v3305_v43, %v924_v39 }
  0xe7   : > { %v1011_v52 = vadd.f32 %v3473_v42, %v3470_v40  ;;  %v1075_v53 = vmul.f32 %v3470_v40, %v3470_v40  ;;  %v1076_v54 = vmul.f32 %v3473_v42, %v3473_v42 }
  0xe8   : > { %v676_v58 = vpop.f32.mrf.mxu0  ;;  %v741_v59 = vpop.f32.mrf.mxu1 }
  0xe9   : > { %1012 = vadd.xlane.f32.xlu2 %v1011_v52  ;;  %v1114_v57 = vadd.f32 %v1076_v54, %v1075_v53  ;;  %v1546_v52 = vld [vmem:[%s4617_s7 + $0x58] sm:$0xff] }
  0xea   : > { %v861_v55 = vpop.f32.mrf.mxu2  ;;  %v926_v56 = vpop.f32.mrf.mxu3  ;;  %v1578_v53 = vld [vmem:[%s4617_s7 + $0x158] sm:$0xff]  ;;  %1745 = vmatpush.msrb.mxu2 %v1546_v52 }
  0xeb   : > { %v862_v60 = vadd.f32 %v861_v55, %v676_v58  ;;  %v927_v63 = vadd.f32 %v926_v56, %v741_v59  ;;  %1115 = vadd.xlane.f32.xlu0 %v1114_v57  ;;  %1810 = vmatpush.msrb.mxu3 %v1578_v53 }
  0xed   : > { %v3494_v0 = vadd.f32 %v3303_v41, %v862_v60  ;;  %v3497_v1 = vadd.f32 %v3305_v43, %v927_v63 }
  0xef   : > { %v1014_v8 = vadd.f32 %v3497_v1, %v3494_v0  ;;  %v1077_v9 = vmul.f32 %v3494_v0, %v3494_v0  ;;  %v1078_v10 = vmul.f32 %v3497_v1, %v3497_v1 }
  0xf0   : > { %v679_v16 = vpop.f32.mrf.mxu0  ;;  %v744_v17 = vpop.f32.mrf.mxu1 }
  0xf1   : > { %1015 = vadd.xlane.f32.xlu1 %v1014_v8  ;;  %v1117_v15 = vadd.f32 %v1078_v10, %v1077_v9  ;;  %v1545_v8 = vld [vmem:[%s4617_s7 + $0x50] sm:$0xff] }
  0xf2   : > { %v864_v11 = vpop.f32.mrf.mxu2  ;;  %v929_v12 = vpop.f32.mrf.mxu3  ;;  %1615 = vmatpush.msrb.mxu0 %v1545_v8 }
  0xf3   : > { %v865_v18 = vadd.f32 %v864_v11, %v679_v16  ;;  %v930_v19 = vadd.f32 %v929_v12, %v744_v17  ;;  %1118 = vadd.xlane.f32.xlu2 %v1117_v15  ;;  %v1577_v12 = vld [vmem:[%s4617_s7 + $0x150] sm:$0xff]  ;;  %v1544_v15 = vld [vmem:[%s4617_s7 + $0x48] sm:$0xff] }
  0xf4   : > { %v1576_v16 = vld [vmem:[%s4617_s7 + $0x148] sm:$0xff]  ;;  %1680 = vmatpush.msrb.mxu1 %v1577_v12  ;;  %1746 = vmatpush.msrb.mxu2 %v1544_v15 }
  0xf5   : > { %v3518_v20 = vadd.f32 %v3303_v41, %v865_v18  ;;  %v3521_v21 = vadd.f32 %v3305_v43, %v930_v19  ;;  %1811 = vmatpush.msrb.mxu3 %v1576_v16  ;;  %1616 = vmatpush.msrb.mxu0 %v1543_v24 }
  0xf7   : > { %v1017_v28 = vadd.f32 %v3521_v21, %v3518_v20  ;;  %v1079_v31 = vmul.f32 %v3518_v20, %v3518_v20  ;;  %v1080_v32 = vmul.f32 %v3521_v21, %v3521_v21 }
  0xf8   : > { %v682_v36 = vpop.f32.mrf.mxu0  ;;  %v747_v37 = vpop.f32.mrf.mxu1 }
  0xf9   : > { %1018 = vadd.xlane.f32.xlu0 %v1017_v28  ;;  %v1120_v35 = vadd.f32 %v1080_v32, %v1079_v31 }
  0xfa   : > { %v867_v33 = vpop.f32.mrf.mxu2  ;;  %v932_v34 = vpop.f32.mrf.mxu3 }
  0xfb   : > { %v868_v38 = vadd.f32 %v867_v33, %v682_v36  ;;  %v933_v39 = vadd.f32 %v932_v34, %v747_v37  ;;  %1121 = vadd.xlane.f32.xlu1 %v1120_v35  ;;  %v3036_v33 = vmov 256.0  }
  0xfc   : > { %2795 = vrcp.f32 %v3036_v33 }
  0xfd   : > { %v3542_v44 = vadd.f32 %v3303_v41, %v868_v38  ;;  %v3545_v45 = vadd.f32 %v3305_v43, %v933_v39 }
  0xff   : > { %v1020_v54 = vadd.f32 %v3545_v45, %v3542_v44  ;;  %v1081_v55 = vmul.f32 %v3542_v44, %v3542_v44  ;;  %v1082_v56 = vmul.f32 %v3545_v45, %v3545_v45 }
 0x100   : > { %v685_v60 = vpop.f32.mrf.mxu0  ;;  %v750_v63 = vpop.f32.mrf.mxu1 }
 0x101   : > { %1021 = vadd.xlane.f32.xlu2 %v1020_v54  ;;  %v1123_v59 = vadd.f32 %v1082_v56, %v1081_v55 }
 0x102   : > { %v870_v57 = vpop.f32.mrf.mxu2  ;;  %v935_v58 = vpop.f32.mrf.mxu3 }
 0x103   : > { %v871_v2 = vadd.f32 %v870_v57, %v685_v60  ;;  %v936_v3 = vadd.f32 %v935_v58, %v750_v63  ;;  %1124 = vadd.xlane.f32.xlu0 %v1123_v59  ;;  %v2796_v52 = vpop.eup %2795 }
 0x104   : > { %v1039_v57 = vmul.f32 256.0, %v2796_v52  ;;  %vm1043_vm3 = vweird.f32 %v2796_v52 }
 0x105   : > { %v3566_v6 = vadd.f32 %v3303_v41, %v871_v2  ;;  %v3569_v7 = vadd.f32 %v3305_v43, %v936_v3 }
 0x107   : > { %v1023_v9 = vadd.f32 %v3569_v7, %v3566_v6  ;;  %v1083_v10 = vmul.f32 %v3566_v6, %v3566_v6  ;;  %v1084_v11 = vmul.f32 %v3569_v7, %v3569_v7 }
 0x108   : > { %v688_v25 = vpop.f32.mrf.mxu0  ;;  %v753_v26 = vpop.f32.mrf.mxu1 }
 0x109   : > { %1024 = vadd.xlane.f32.xlu1 %v1023_v9  ;;  %v1126_v19 = vadd.f32 %v1084_v11, %v1083_v10  ;;  %v1040_v10 = vsub.f32 1.0, %v1039_v57 }
 0x10a   : > { %v873_v17 = vpop.f32.mrf.mxu2  ;;  %v938_v18 = vpop.f32.mrf.mxu3 }
 0x10b   : > { %v874_v27 = vadd.f32 %v873_v17, %v688_v25  ;;  %v939_v28 = vadd.f32 %v938_v18, %v753_v26  ;;  %1127 = vadd.xlane.f32.xlu2 %v1126_v19  ;;  %v1041_v17 = vmul.f32 %v2796_v52, %v1040_v10  ;;  %v1570_v10 = vld [vmem:[%s4617_s7 + $0x118] sm:$0xff] }
 0x10d   : > { %v3593_v31 = vadd.f32 %v3303_v41, %v874_v27  ;;  %v3596_v32 = vadd.f32 %v3305_v43, %v939_v28 }
 0x10f   : > { %v1026_v34 = vadd.f32 %v3596_v32, %v3593_v31  ;;  %v1085_v35 = vmul.f32 %v3593_v31, %v3593_v31  ;;  %v1086_v36 = vmul.f32 %v3596_v32, %v3596_v32 }
 0x110   : > { %v691_v46 = vpop.f32.mrf.mxu0  ;;  %v756_v47 = vpop.f32.mrf.mxu1 }
 0x111   : > { %1027 = vadd.xlane.f32.xlu0 %v1026_v34  ;;  %v1129_v39 = vadd.f32 %v1086_v36, %v1085_v35  ;;  %v1042_v34 = vadd.f32 %v2796_v52, %v1041_v17  ;;  %v1575_v35 = vld [vmem:[%s4617_s7 + $0x140] sm:$0xff]  ;;  %v1542_v36 = vld [vmem:[%s4617_s7 + $0x38] sm:$0xff] }
 0x112   : > { %v876_v37 = vpop.f32.mrf.mxu2  ;;  %v941_v38 = vpop.f32.mrf.mxu3  ;;  %1681 = vmatpush.msrb.mxu1 %v1575_v35  ;;  %1747 = vmatpush.msrb.mxu2 %v1542_v36 }
 0x113   : > { %v877_v53 = vadd.f32 %v876_v37, %v691_v46  ;;  %v942_v54 = vadd.f32 %v941_v38, %v756_v47  ;;  %1130 = vadd.xlane.f32.xlu1 %v1129_v39  ;;  %v1574_v37 = vld [vmem:[%s4617_s7 + $0x138] sm:$0xff]  ;;  %v1541_v46 = vld [vmem:[%s4617_s7 + $0x30] sm:$0xff]  ;;  %v3646_v57 = vsel %vm1043_vm3, %v2796_v52, %v1042_v34  ;;  %v1572_v52 = vld [vmem:[%s4617_s7 + $0x128] sm:$0xff] }
 0x114   : > { %1812 = vmatpush.msrb.mxu3 %v1574_v37  ;;  %1617 = vmatpush.msrb.mxu0 %v1541_v46 }
 0x115   : > { %v3605_v55 = vadd.f32 %v3303_v41, %v877_v53  ;;  %v3608_v56 = vadd.f32 %v3305_v43, %v942_v54 }
 0x116   : > { %1813 = vmatpush.msrb.mxu3 %v1572_v52 }
 0x117   : > { %v1029_v58 = vadd.f32 %v3608_v56, %v3605_v55  ;;  %v1087_v59 = vmul.f32 %v3605_v55, %v3605_v55  ;;  %v1088_v60 = vmul.f32 %v3608_v56, %v3608_v56 }
 0x118   : > { %v694_v8 = vpop.f32.mrf.mxu0  ;;  %v759_v9 = vpop.f32.mrf.mxu1  ;;  %1814 = vmatpush.msrb.mxu3 %v1570_v10 }
 0x119   : > { %1030 = vadd.xlane.f32.xlu2 %v1029_v58  ;;  %v1132_v3 = vadd.f32 %v1088_v60, %v1087_v59  ;;  %v1573_v58 = vld [vmem:[%s4617_s7 + $0x130] sm:$0xff] }
 0x11a   : > { %v879_v63 = vpop.f32.mrf.mxu2  ;;  %v944_v2 = vpop.f32.mrf.mxu3  ;;  %1682 = vmatpush.msrb.mxu1 %v1573_v58 }
 0x11b   : > { %v880_v11 = vadd.f32 %v879_v63, %v694_v8  ;;  %v945_v12 = vadd.f32 %v944_v2, %v759_v9  ;;  %1133 = vadd.xlane.f32.xlu0 %v1132_v3  ;;  %v1539_v63 = vld [vmem:[%s4617_s7 + $0x20] sm:$0xff]  ;;  %v1538_v9 = vld [vmem:[%s4617_s7 + $0x18] sm:$0xff] }
 0x11c   : > { %v1571_v3 = vld [vmem:[%s4617_s7 + $0x120] sm:$0xff]  ;;  %1618 = vmatpush.msrb.mxu0 %v1539_v63 }
 0x11d   : > { %v3617_v15 = vadd.f32 %v3303_v41, %v880_v11  ;;  %v3620_v16 = vadd.f32 %v3305_v43, %v945_v12  ;;  %v1537_v11 = vld [vmem:[%s4617_s7 + $0x10] sm:$0xff]  ;;  %1683 = vmatpush.msrb.mxu1 %v1571_v3 }
 0x11e   : > { %v1569_v12 = vld [vmem:[%s4617_s7 + $0x110] sm:$0xff]  ;;  %1619 = vmatpush.msrb.mxu0 %v1537_v11 }
 0x11f   : > { %v1032_v18 = vadd.f32 %v3620_v16, %v3617_v15  ;;  %v1089_v19 = vmul.f32 %v3617_v15, %v3617_v15  ;;  %v1090_v24 = vmul.f32 %v3620_v16, %v3620_v16  ;;  %1684 = vmatpush.msrb.mxu1 %v1569_v12 }
 0x120   : > { %v697_v28 = vpop.f32.mrf.mxu0  ;;  %v762_v33 = vpop.f32.mrf.mxu1 }
 0x121   : > { %1033 = vadd.xlane.f32.xlu1 %v1032_v18  ;;  %v1135_v27 = vadd.f32 %v1090_v24, %v1089_v19  ;;  %v1536_v19 = vld [vmem:[%s4617_s7 + $0x8] sm:$0xff] }
 0x122   : > { %v882_v25 = vpop.f32.mrf.mxu2  ;;  %v947_v26 = vpop.f32.mrf.mxu3  ;;  %v1568_v24 = vld [vmem:[%s4617_s7 + $0x108] sm:$0xff] }
 0x123   : > { %v883_v38 = vadd.f32 %v882_v25, %v697_v28  ;;  %v948_v39 = vadd.f32 %v947_v26, %v762_v33  ;;  %1136 = vadd.xlane.f32.xlu2 %v1135_v27  ;;  %v1535_v25 = vld [vmem:[%s4617_s7] sm:$0xff]  ;;  %1815 = vmatpush.msrb.mxu3 %v1568_v24 }
 0x124   : > { %v992_v47 = vpop.xlane.xlu0 %991  ;;  %v1567_v28 = vld [vmem:[%s4617_s7 + $0x100] sm:$0xff]  ;;  %1620 = vmatpush.msrb.mxu0 %v1535_v25 }
 0x125   : > { %v3641_v53 = vadd.f32 %v3303_v41, %v883_v38  ;;  %v3644_v54 = vadd.f32 %v3305_v43, %v948_v39  ;;  %v1540_v43 = vld [vmem:[%s4617_s7 + $0x28] sm:$0xff]  ;;  %v3667_v2 = vmul.f32 %v3646_v57, %v992_v47  ;;  %1685 = vmatpush.msrb.mxu1 %v1567_v28 }
 0x126   : > { %1748 = vmatpush.msrb.mxu2 %v1540_v43 }
 0x127   : > { %v1035_v59 = vadd.f32 %v3644_v54, %v3641_v53  ;;  %v1091_v60 = vmul.f32 %v3641_v53, %v3641_v53  ;;  %v1092_v41 = vmul.f32 %v3644_v54, %v3644_v54  ;;  %v1157_v26 = vmul.f32 %v3667_v2, %v3667_v2 }
 0x128   : > { %1749 = vmatpush.msrb.mxu2 %v1538_v9 }
 0x129   : > { %1036 = vadd.xlane.f32.xlu0 %v1035_v59  ;;  %v1138_v8 = vadd.f32 %v1092_v41, %v1091_v60 }
 0x12a   : > { %1750 = vmatpush.msrb.mxu2 %v1536_v19  ;;  %v988_v19 = vld [vmem:[%s4615_s5] sm:$0x3] }
 0x12b   : > { %1139 = vadd.xlane.f32.xlu1 %v1138_v8 }
 0x12c   : > { %v995_v17 = vpop.xlane.xlu1 %994  ;;  %v1095_v18 = vpop.xlane.xlu0 %1094 }
 0x12d   : > { %v1141_v27 = vmul.f32 %v1095_v18, %v3646_v57  ;;  %v3700_v34 = vmul.f32 %v3646_v57, %v995_v17 }
 0x12f   : > { %v1173_v33 = vsub.f32 %v1141_v27, %v1157_v26  ;;  %v1158_v38 = vmul.f32 %v3700_v34, %v3700_v34 }
 0x131   : > { %v1221_v35 = vadd.f32 1e-05, %v1173_v33  ;;  %v1189_v33 = vsub.f32 %v3308_v48, %v3667_v2 }
 0x133   : > { %2797 = vrsqrt.f32 %v1221_v35  ;;  %vm1243_vm5 = vweird.f32 %v1221_v35 }
 0x134   : > { %v998_v36 = vpop.xlane.xlu2 %997  ;;  %v1098_v37 = vpop.xlane.xlu1 %1097 }
 0x135   : > { %v1142_v39 = vmul.f32 %v1098_v37, %v3646_v57  ;;  %v3706_v58 = vmul.f32 %v3646_v57, %v998_v36  ;;  %v1190_v36 = vsub.f32 %v3311_v49, %v3667_v2  ;;  %v989_v37 = vld [vmem:[%s4616_s6] sm:$0x3] }
 0x137   : > { %v1174_v46 = vsub.f32 %v1142_v39, %v1158_v38  ;;  %v1159_v63 = vmul.f32 %v3706_v58, %v3706_v58  ;;  %v3730_v38 = vperm.slane %v988_v19, 0 }
 0x139   : > { %v2798_v47 = vpop.eup %2797  ;;  %v1222_v59 = vadd.f32 1e-05, %v1174_v46 }
 0x13a   : > { %v1238_v60 = vmul.f32 %v2798_v47, %v1221_v35  ;;  %vm1244_vm4 = vweird.f32 %v2798_v47 }
 0x13b   : > { %2799 = vrsqrt.f32 %v1222_v59  ;;  %vm1245_vm6 = vmor %vm1243_vm5, %vm1244_vm4  ;;  %vm1253_vm8 = vweird.f32 %v1222_v59 }
 0x13c   : > { %v1239_v41 = vmul.f32 %v2798_v47, %v1238_v60  ;;  %v1101_v43 = vpop.xlane.xlu2 %1100  ;;  %v1001_v52 = vpop.xlane.xlu0 %1000 }
 0x13d   : > { %v1143_v3 = vmul.f32 %v1101_v43, %v3646_v57  ;;  %v3712_v8 = vmul.f32 %v3646_v57, %v1001_v52 }
 0x13e   : > { %v1240_v9 = vmul.f32 0.5, %v1239_v41  ;;  %v1104_v10 = vpop.xlane.xlu1 %1103  ;;  %v3734_v41 = vperm.slane %v988_v19, 1 }
 0x13f   : > { %v1175_v11 = vsub.f32 %v1143_v3, %v1159_v63  ;;  %v1144_v12 = vmul.f32 %v1104_v10, %v3646_v57  ;;  %v1160_v18 = vmul.f32 %v3712_v8, %v3712_v8  ;;  %v3740_v63 = vperm.slane %v989_v37, 0 }
 0x140   : > { %v1241_v17 = vsub.f32 1.5, %v1240_v9  ;;  %v3742_v3 = vperm.slane %v989_v37, 1 }
 0x141   : > { %v2800_v24 = vpop.eup %2799  ;;  %v3720_v25 = vadd.f32 1e-05, %v1175_v11  ;;  %v1176_v28 = vsub.f32 %v1144_v12, %v1160_v18 }
 0x142   : > { %v1242_v26 = vmul.f32 %v2798_v47, %v1241_v17  ;;  %v1248_v27 = vmul.f32 %v2800_v24, %v1222_v59  ;;  %vm1254_vm7 = vweird.f32 %v2800_v24 }
 0x143   : > { %2801 = vrsqrt.f32 %v3720_v25  ;;  %v3732_v46 = vadd.f32 1e-05, %v1176_v28  ;;  %vm1255_vm9 = vmor %vm1253_vm8, %vm1254_vm7  ;;  %vm1263_vm11 = vweird.f32 %v3720_v25 }
 0x144   : > { %v1249_v39 = vmul.f32 %v2800_v24, %v1248_v27  ;;  %v1004_v35 = vpop.xlane.xlu2 %1003  ;;  %v1246_v60 = vsel %vm1245_vm6, %v2798_v47, %v1242_v26 }
 0x145   : > { %v3737_v48 = vmul.f32 %v3646_v57, %v1004_v35  ;;  %v1397_v49 = vmul.f32 %v1246_v60, %v1189_v33  ;;  %v1398_v2 = vmul.f32 %v1246_v60, %v1190_v36  ;;  %2803 = vrsqrt.f32 %v3732_v46 }
 0x146   : > { %v1250_v43 = vmul.f32 0.5, %v1249_v39  ;;  %v1107_v52 = vpop.xlane.xlu0 %1106  ;;  %vm1273_vm13 = vweird.f32 %v3732_v46 }
 0x147   : > { %v1161_v9 = vmul.f32 %v3737_v48, %v3737_v48  ;;  %v1145_v47 = vmul.f32 %v1107_v52, %v3646_v57  ;;  %v1434_v11 = vmul.f32 %v3730_v38, %v1397_v49  ;;  %v1435_v12 = vmul.f32 %v3734_v41, %v1398_v2 }
 0x148   : > { %v1251_v10 = vsub.f32 1.5, %v1250_v43  ;;  %v1191_v49 = vsub.f32 %v3326_v61, %v3700_v34  ;;  %v1192_v43 = vsub.f32 %v3329_v62, %v3700_v34 }
 0x149   : > { %v2802_v17 = vpop.eup %2801  ;;  %v1177_v18 = vsub.f32 %v1145_v47, %v1161_v9  ;;  %v1471_v26 = vadd.f32 %v3740_v63, %v1434_v11  ;;  %v1472_v27 = vadd.f32 %v3742_v3, %v1435_v12 }
 0x14a   : > { %v1258_v19 = vmul.f32 %v2802_v17, %v3720_v25  ;;  %v1252_v33 = vmul.f32 %v2800_v24, %v1251_v10  ;;  %vm1264_vm10 = vweird.f32 %v2802_v17 }
 0x14b   : > { %v3752_v28 = vadd.f32 1e-05, %v1177_v18  ;;  %v3754_v36 = vpop.eup %2803  ;;  %v1503_v35 = vmax.f32 %v1471_v26, 0.0  ;;  %v1504_v60 = vmax.f32 %v1472_v27, 0.0  ;;  %vm1265_vm12 = vmor %vm1263_vm11, %vm1264_vm10 }
 0x14c   : > { %v1259_v37 = vmul.f32 %v2802_v17, %v1258_v19  ;;  %v1007_v39 = vpop.xlane.xlu1 %1006  ;;  %v1268_v2 = vmul.f32 %v3754_v36, %v3732_v46  ;;  %v1256_v47 = vsel %vm1255_vm9, %v2800_v24, %v1252_v33  ;;  %v1193_v33 = vsub.f32 %v3350_v13, %v3706_v58 }
 0x14d   : > { %2805 = vrsqrt.f32 %v3752_v28  ;;  %v3764_v9 = vmul.f32 %v3646_v57, %v1007_v39  ;;  %1621 = vmatmul.f32.vlgmr.msrb.gmra.mxu0 %v1503_v35  ;;  %1686 = vmatmul.f32.vlgmr.msrb.gmra.mxu1 %v1504_v60  ;;  %v1399_v11 = vmul.f32 %v1256_v47, %v1191_v49  ;;  %v1400_v19 = vmul.f32 %v1256_v47, %v1192_v43 }
 0x14e   : > { %v1260_v52 = vmul.f32 0.5, %v1259_v37  ;;  %v1110_v59 = vpop.xlane.xlu2 %1109  ;;  %v1269_v10 = vmul.f32 %v3754_v36, %v1268_v2  ;;  %1751 = vmatmul.f32.vlgmr.msrb.gmra.mxu2 %v1503_v35  ;;  %1816 = vmatmul.f32.vlgmr.msrb.gmra.mxu3 %v1504_v60  ;;  %v1194_v37 = vsub.f32 %v3353_v14, %v3706_v58  ;;  %vm1274_vm14 = vweird.f32 %v3754_v36 }
 0x14f   : > { %v1146_v61 = vmul.f32 %v1110_v59, %v3646_v57  ;;  %v1162_v62 = vmul.f32 %v3764_v9, %v3764_v9  ;;  %v1436_v18 = vmul.f32 %v3730_v38, %v1399_v11  ;;  %v1437_v35 = vmul.f32 %v3734_v41, %v1400_v19  ;;  %vm1275_vm15 = vmor %vm1273_vm13, %vm1274_vm14 }
 0x150   : > { %v1261_v12 = vsub.f32 1.5, %v1260_v52  ;;  %v1270_v34 = vmul.f32 0.5, %v1269_v10  ;;  %vm1283_vm0 = vweird.f32 %v3752_v28 }
 0x151   : > { %v1178_v26 = vsub.f32 %v1146_v61, %v1162_v62  ;;  %v1473_v39 = vadd.f32 %v3740_v63, %v1436_v18  ;;  %v1474_v59 = vadd.f32 %v3742_v3, %v1437_v35  ;;  %v1195_v18 = vsub.f32 %v3374_v29, %v3712_v8 }
 0x152   : > { %v1262_v24 = vmul.f32 %v2802_v17, %v1261_v12  ;;  %v1271_v60 = vsub.f32 1.5, %v1270_v34 }
 0x153   : > { %v3772_v27 = vpop.eup %2805  ;;  %v3782_v25 = vadd.f32 1e-05, %v1178_v26  ;;  %v1505_v13 = vmax.f32 %v1473_v39, 0.0  ;;  %v1506_v61 = vmax.f32 %v1474_v59, 0.0 }
 0x154   : > { %v1278_v49 = vmul.f32 %v3772_v27, %v3752_v28  ;;  %v1010_v2 = vpop.xlane.xlu0 %1009  ;;  %v1266_v43 = vsel %vm1265_vm12, %v2802_v17, %v1262_v24  ;;  %v1272_v46 = vmul.f32 %v3754_v36, %v1271_v60  ;;  %vm1284_vm1 = vweird.f32 %v3772_v27 }
 0x155   : > { %v3785_v52 = vmul.f32 %v3646_v57, %v1010_v2  ;;  %v1401_v14 = vmul.f32 %v1266_v43, %v1193_v33  ;;  %2807 = vrsqrt.f32 %v3782_v25  ;;  %v1402_v10 = vmul.f32 %v1266_v43, %v1194_v37  ;;  %1624 = vmatmul.f32.gmra.mxu0 %v1505_v13  ;;  %1689 = vmatmul.f32.gmra.mxu1 %v1506_v61  ;;  %vm1285_vm2 = vmor %vm1283_vm0, %vm1284_vm1 }
 0x156   : > { %v1279_v58 = vmul.f32 %v3772_v27, %v1278_v49  ;;  %v1113_v47 = vpop.xlane.xlu1 %1112  ;;  %1754 = vmatmul.f32.gmra.mxu2 %v1505_v13  ;;  %1819 = vmatmul.f32.gmra.mxu3 %v1506_v61  ;;  %v1196_v37 = vsub.f32 %v3377_v30, %v3712_v8  ;;  %v1276_v39 = vsel %vm1275_vm15, %v3754_v36, %v1272_v46  ;;  %vm1293_vm3 = vweird.f32 %v3782_v25 }
 0x157   : > { %v1147_v17 = vmul.f32 %v1113_v47, %v3646_v57  ;;  %v1163_v12 = vmul.f32 %v3785_v52, %v3785_v52  ;;  %v1438_v62 = vmul.f32 %v3730_v38, %v1401_v14  ;;  %v1439_v34 = vmul.f32 %v3734_v41, %v1402_v10 }
 0x158   : > { %v1280_v11 = vmul.f32 0.5, %v1279_v58  ;;  %v1403_v2 = vmul.f32 %v1276_v39, %v1195_v18  ;;  %v1404_v14 = vmul.f32 %v1276_v39, %v1196_v37  ;;  %v1197_v47 = vsub.f32 %v3398_v50, %v3737_v48 }
 0x159   : > { %v1179_v26 = vsub.f32 %v1147_v17, %v1163_v12  ;;  %v1475_v24 = vadd.f32 %v3740_v63, %v1438_v62  ;;  %v1476_v33 = vadd.f32 %v3742_v3, %v1439_v34 }
 0x15a   : > { %v1281_v19 = vsub.f32 1.5, %v1280_v11  ;;  %v1440_v8 = vmul.f32 %v3730_v38, %v1403_v2  ;;  %v1441_v17 = vmul.f32 %v3734_v41, %v1404_v14  ;;  %v1198_v11 = vsub.f32 %v3401_v51, %v3737_v48 }
 0x15b   : > { %v2808_v35 = vpop.eup %2807  ;;  %v3807_v29 = vadd.f32 1e-05, %v1179_v26  ;;  %v1507_v49 = vmax.f32 %v1475_v24, 0.0  ;;  %v1508_v59 = vmax.f32 %v1476_v33, 0.0 }
 0x15c   : > { %v1013_v60 = vpop.xlane.xlu2 %1012  ;;  %v1288_v43 = vmul.f32 %v2808_v35, %v3782_v25  ;;  %v1282_v36 = vmul.f32 %v3772_v27, %v1281_v19  ;;  %v1477_v50 = vadd.f32 %v3740_v63, %v1440_v8  ;;  %v1478_v46 = vadd.f32 %v3742_v3, %v1441_v17 }
 0x15d   : > { %v3811_v13 = vmul.f32 %v3646_v57, %v1013_v60  ;;  %2809 = vrsqrt.f32 %v3807_v29  ;;  %1627 = vmatmul.f32.gmra.mxu0 %v1507_v49  ;;  %1692 = vmatmul.f32.gmra.mxu1 %v1508_v59  ;;  %vm1294_vm4 = vweird.f32 %v2808_v35  ;;  %vm1303_vm6 = vweird.f32 %v3807_v29 }
 0x15e   : > { %v1116_v30 = vpop.xlane.xlu0 %1115  ;;  %v1289_v58 = vmul.f32 %v2808_v35, %v1288_v43  ;;  %1757 = vmatmul.f32.gmra.mxu2 %v1507_v49  ;;  %1822 = vmatmul.f32.gmra.mxu3 %v1508_v59  ;;  %v1286_v62 = vsel %vm1285_vm2, %v3772_v27, %v1282_v36  ;;  %v1509_v27 = vmax.f32 %v1477_v50, 0.0  ;;  %v1510_v2 = vmax.f32 %v1478_v46, 0.0  ;;  %vm1295_vm5 = vmor %vm1293_vm3, %vm1294_vm4 }
 0x15f   : > { %v1164_v10 = vmul.f32 %v3811_v13, %v3811_v13  ;;  %v1148_v61 = vmul.f32 %v1116_v30, %v3646_v57  ;;  %v1405_v28 = vmul.f32 %v1286_v62, %v1197_v47  ;;  %v1406_v19 = vmul.f32 %v1286_v62, %v1198_v11 }
 0x160   : > { %v1290_v12 = vmul.f32 0.5, %v1289_v58  ;;  %v1199_v59 = vsub.f32 %v3422_v4, %v3764_v9  ;;  %v1200_v36 = vsub.f32 %v3425_v5, %v3764_v9 }
 0x161   : > { %v1180_v34 = vsub.f32 %v1148_v61, %v1164_v10  ;;  %v1442_v51 = vmul.f32 %v3730_v38, %v1405_v28  ;;  %v1443_v43 = vmul.f32 %v3734_v41, %v1406_v19 }
 0x162   : > { %v1291_v18 = vsub.f32 1.5, %v1290_v12 }
 0x163   : > { %v2810_v26 = vpop.eup %2809  ;;  %v3832_v24 = vadd.f32 1e-05, %v1180_v34  ;;  %v1479_v8 = vadd.f32 %v3740_v63, %v1442_v51  ;;  %v1480_v25 = vadd.f32 %v3742_v3, %v1443_v43 }
 0x164   : > { %v1016_v33 = vpop.xlane.xlu1 %1015  ;;  %v1298_v48 = vmul.f32 %v2810_v26, %v3807_v29  ;;  %v1292_v60 = vmul.f32 %v2808_v35, %v1291_v18  ;;  %vm1304_vm7 = vweird.f32 %v2810_v26 }
 0x165   : > { %v3837_v37 = vmul.f32 %v3646_v57, %v1016_v33  ;;  %2811 = vrsqrt.f32 %v3832_v24  ;;  %1630 = vmatmul.f32.gmra.mxu0 %v1509_v27  ;;  %1695 = vmatmul.f32.gmra.mxu1 %v1510_v2  ;;  %v1511_v62 = vmax.f32 %v1479_v8, 0.0  ;;  %v1512_v46 = vmax.f32 %v1480_v25, 0.0  ;;  %vm1305_vm8 = vmor %vm1303_vm6, %vm1304_vm7 }
 0x166   : > { %v1119_v39 = vpop.xlane.xlu2 %1118  ;;  %v1299_v49 = vmul.f32 %v2810_v26, %v1298_v48  ;;  %1760 = vmatmul.f32.gmra.mxu2 %v1509_v27  ;;  %1825 = vmatmul.f32.gmra.mxu3 %v1510_v2  ;;  %v1296_v47 = vsel %vm1295_vm5, %v2808_v35, %v1292_v60  ;;  %v1201_v33 = vsub.f32 %v3446_v22, %v3785_v52  ;;  %vm1313_vm9 = vweird.f32 %v3832_v24 }
 0x167   : > { %v1149_v14 = vmul.f32 %v1119_v39, %v3646_v57  ;;  %v1165_v30 = vmul.f32 %v3837_v37, %v3837_v37  ;;  %v1407_v61 = vmul.f32 %v1296_v47, %v1199_v59  ;;  %v1408_v17 = vmul.f32 %v1296_v47, %v1200_v36 }
 0x168   : > { %v1300_v58 = vmul.f32 0.5, %v1299_v49  ;;  %v1202_v27 = vsub.f32 %v3449_v23, %v3785_v52  ;;  %v1203_v25 = vsub.f32 %v3470_v40, %v3811_v13 }
 0x169   : > { %v1181_v10 = vsub.f32 %v1149_v14, %v1165_v30  ;;  %v1444_v35 = vmul.f32 %v3730_v38, %v1407_v61  ;;  %v1445_v19 = vmul.f32 %v3734_v41, %v1408_v17 }
 0x16a   : > { %v1301_v4 = vsub.f32 1.5, %v1300_v58 }
 0x16b   : > { %v2812_v11 = vpop.eup %2811  ;;  %v3853_v12 = vadd.f32 1e-05, %v1181_v10  ;;  %v1481_v60 = vadd.f32 %v3740_v63, %v1444_v35  ;;  %v1482_v29 = vadd.f32 %v3742_v3, %v1445_v19 }
 0x16c   : > { %v1019_v50 = vpop.xlane.xlu0 %1018  ;;  %v1308_v5 = vmul.f32 %v2812_v11, %v3832_v24  ;;  %v1302_v34 = vmul.f32 %v2810_v26, %v1301_v4  ;;  %vm1314_vm10 = vweird.f32 %v2812_v11 }
 0x16d   : > { %v3857_v9 = vmul.f32 %v3646_v57, %v1019_v50  ;;  %2813 = vrsqrt.f32 %v3853_v12  ;;  %1633 = vmatmul.f32.gmra.mxu0 %v1511_v62  ;;  %1698 = vmatmul.f32.gmra.mxu1 %v1512_v46  ;;  %v1514_v61 = vmax.f32 %v1482_v29, 0.0  ;;  %vm1315_vm11 = vmor %vm1313_vm9, %vm1314_vm10  ;;  %vm1323_vm12 = vweird.f32 %v3853_v12 }
 0x16e   : > { %v1122_v28 = vpop.xlane.xlu1 %1121  ;;  %v1309_v18 = vmul.f32 %v2812_v11, %v1308_v5  ;;  %1763 = vmatmul.f32.gmra.mxu2 %v1511_v62  ;;  %1828 = vmatmul.f32.gmra.mxu3 %v1512_v46  ;;  %v1306_v49 = vsel %vm1305_vm8, %v2810_v26, %v1302_v34  ;;  %v1513_v26 = vmax.f32 %v1481_v60, 0.0  ;;  %v1204_v5 = vsub.f32 %v3473_v42, %v3811_v13 }
 0x16f   : > { %v1150_v51 = vmul.f32 %v1122_v28, %v3646_v57  ;;  %v1166_v48 = vmul.f32 %v3857_v9, %v3857_v9  ;;  %v1409_v22 = vmul.f32 %v1306_v49, %v1201_v33  ;;  %v1410_v59 = vmul.f32 %v1306_v49, %v1202_v27 }
 0x170   : > { %v1310_v39 = vmul.f32 0.5, %v1309_v18 }
 0x171   : > { %v1182_v2 = vsub.f32 %v1150_v51, %v1166_v48  ;;  %v1446_v23 = vmul.f32 %v3730_v38, %v1409_v22  ;;  %v1447_v4 = vmul.f32 %v3734_v41, %v1410_v59  ;;  %v1205_v22 = vsub.f32 %v3494_v0, %v3837_v37 }
 0x172   : > { %v1311_v43 = vsub.f32 1.5, %v1310_v39  ;;  %v1206_v59 = vsub.f32 %v3497_v1, %v3837_v37 }
 0x173   : > { %v2814_v14 = vpop.eup %2813  ;;  %v3875_v30 = vadd.f32 1e-05, %v1182_v2  ;;  %v1483_v62 = vadd.f32 %v3740_v63, %v1446_v23  ;;  %v1484_v24 = vadd.f32 %v3742_v3, %v1447_v4 }
 0x174   : > { %v1022_v8 = vpop.xlane.xlu2 %1021  ;;  %v1318_v52 = vmul.f32 %v2814_v14, %v3853_v12  ;;  %v1312_v58 = vmul.f32 %v2812_v11, %v1311_v43  ;;  %vm1324_vm13 = vweird.f32 %v2814_v14 }
 0x175   : > { %v3880_v36 = vmul.f32 %v3646_v57, %v1022_v8  ;;  %2815 = vrsqrt.f32 %v3875_v30  ;;  %1636 = vmatmul.f32.gmra.mxu0 %v1513_v26  ;;  %1701 = vmatmul.f32.gmra.mxu1 %v1514_v61  ;;  %v1515_v48 = vmax.f32 %v1483_v62, 0.0  ;;  %v1516_v49 = vmax.f32 %v1484_v24, 0.0  ;;  %vm1325_vm14 = vmor %vm1323_vm12, %vm1324_vm13 }
 0x176   : > { %v1125_v47 = vpop.xlane.xlu0 %1124  ;;  %v1319_v10 = vmul.f32 %v2814_v14, %v1318_v52  ;;  %1766 = vmatmul.f32.gmra.mxu2 %v1513_v26  ;;  %1831 = vmatmul.f32.gmra.mxu3 %v1514_v61  ;;  %v1316_v34 = vsel %vm1315_vm11, %v2812_v11, %v1312_v58  ;;  %vm1333_vm15 = vweird.f32 %v3875_v30  ;;  %v1208_v24 = vsub.f32 %v3521_v21, %v3857_v9 }
 0x177   : > { %v1167_v17 = vmul.f32 %v3880_v36, %v3880_v36  ;;  %v1151_v50 = vmul.f32 %v1125_v47, %v3646_v57  ;;  %v1411_v40 = vmul.f32 %v1316_v34, %v1203_v25  ;;  %v1412_v46 = vmul.f32 %v1316_v34, %v1204_v5 }
 0x178   : > { %v1320_v35 = vmul.f32 0.5, %v1319_v10  ;;  %v1207_v34 = vsub.f32 %v3518_v20, %v3857_v9 }
 0x179   : > { %v1183_v28 = vsub.f32 %v1151_v50, %v1167_v17  ;;  %v1448_v11 = vmul.f32 %v3730_v38, %v1411_v40  ;;  %v1449_v2 = vmul.f32 %v3734_v41, %v1412_v46 }
 0x17a   : > { %v1321_v18 = vsub.f32 1.5, %v1320_v35 }
 0x17b   : > { %v2816_v19 = vpop.eup %2815  ;;  %v3897_v33 = vadd.f32 1e-05, %v1183_v28  ;;  %v1485_v23 = vadd.f32 %v3740_v63, %v1448_v11  ;;  %v1486_v12 = vadd.f32 %v3742_v3, %v1449_v2 }
 0x17c   : > { %v1025_v51 = vpop.xlane.xlu1 %1024  ;;  %v1322_v27 = vmul.f32 %v2814_v14, %v1321_v18  ;;  %v1328_v42 = vmul.f32 %v2816_v19, %v3875_v30  ;;  %vm1334_vm0 = vweird.f32 %v2816_v19 }
 0x17d   : > { %v3901_v13 = vmul.f32 %v3646_v57, %v1025_v51  ;;  %2817 = vrsqrt.f32 %v3897_v33  ;;  %1639 = vmatmul.f32.gmra.mxu0 %v1515_v48  ;;  %1704 = vmatmul.f32.gmra.mxu1 %v1516_v49  ;;  %v1517_v17 = vmax.f32 %v1485_v23, 0.0  ;;  %v1518_v5 = vmax.f32 %v1486_v12, 0.0  ;;  %vm1335_vm1 = vmor %vm1333_vm15, %vm1334_vm0 }
 0x17e   : > { %v1128_v39 = vpop.xlane.xlu2 %1127  ;;  %v1329_v60 = vmul.f32 %v2816_v19, %v1328_v42  ;;  %1769 = vmatmul.f32.gmra.mxu2 %v1515_v48  ;;  %1834 = vmatmul.f32.gmra.mxu3 %v1516_v49  ;;  %v1326_v52 = vsel %vm1325_vm14, %v2814_v14, %v1322_v27  ;;  %vm1343_vm2 = vweird.f32 %v3897_v33 }
 0x17f   : > { %v1152_v43 = vmul.f32 %v1128_v39, %v3646_v57  ;;  %v1168_v29 = vmul.f32 %v3901_v13, %v3901_v13  ;;  %v1413_v0 = vmul.f32 %v1326_v52, %v1205_v22  ;;  %v1414_v47 = vmul.f32 %v1326_v52, %v1206_v59 }
 0x180   : > { %v1330_v8 = vmul.f32 0.5, %v1329_v60 }
 0x181   : > { %v1184_v26 = vsub.f32 %v1152_v43, %v1168_v29  ;;  %v1450_v1 = vmul.f32 %v3730_v38, %v1413_v0  ;;  %v1451_v35 = vmul.f32 %v3734_v41, %v1414_v47 }
 0x182   : > { %v1331_v58 = vsub.f32 1.5, %v1330_v8  ;;  %v1209_v8 = vsub.f32 %v3542_v44, %v3880_v36 }
 0x183   : > { %v2818_v10 = vpop.eup %2817  ;;  %v3919_v61 = vadd.f32 1e-05, %v1184_v26  ;;  %v1487_v18 = vadd.f32 %v3740_v63, %v1450_v1  ;;  %v1488_v30 = vadd.f32 %v3742_v3, %v1451_v35  ;;  %v1210_v26 = vsub.f32 %v3545_v45, %v3880_v36 }
 0x184   : > { %v1028_v4 = vpop.xlane.xlu0 %1027  ;;  %v1332_v37 = vmul.f32 %v2816_v19, %v1331_v58  ;;  %v1338_v25 = vmul.f32 %v2818_v10, %v3897_v33  ;;  %vm1344_vm3 = vweird.f32 %v2818_v10 }
 0x185   : > { %v3924_v14 = vmul.f32 %v3646_v57, %v1028_v4  ;;  %2819 = vrsqrt.f32 %v3919_v61  ;;  %1642 = vmatmul.f32.gmra.mxu0 %v1517_v17  ;;  %1707 = vmatmul.f32.gmra.mxu1 %v1518_v5  ;;  %v1519_v49 = vmax.f32 %v1487_v18, 0.0  ;;  %v1520_v29 = vmax.f32 %v1488_v30, 0.0  ;;  %vm1345_vm4 = vmor %vm1343_vm2, %vm1344_vm3 }
 0x186   : > { %v1131_v50 = vpop.xlane.xlu1 %1130  ;;  %v1339_v62 = vmul.f32 %v2818_v10, %v1338_v25  ;;  %1772 = vmatmul.f32.gmra.mxu2 %v1517_v17  ;;  %1837 = vmatmul.f32.gmra.mxu3 %v1518_v5  ;;  %v1336_v51 = vsel %vm1335_vm1, %v2816_v19, %v1332_v37  ;;  %vm1353_vm5 = vweird.f32 %v3919_v61 }
 0x187   : > { %v1153_v28 = vmul.f32 %v1131_v50, %v3646_v57  ;;  %v1169_v40 = vmul.f32 %v3924_v14, %v3924_v14  ;;  %v1415_v20 = vmul.f32 %v1336_v51, %v1207_v34  ;;  %v1416_v42 = vmul.f32 %v1336_v51, %v1208_v24 }
 0x188   : > { %v1340_v46 = vmul.f32 0.5, %v1339_v62  ;;  %v1212_v51 = vsub.f32 %v3569_v7, %v3901_v13 }
 0x189   : > { %v1185_v48 = vsub.f32 %v1153_v28, %v1169_v40  ;;  %v1452_v19 = vmul.f32 %v3730_v38, %v1415_v20  ;;  %v1453_v59 = vmul.f32 %v3734_v41, %v1416_v42  ;;  %v1211_v40 = vsub.f32 %v3566_v6, %v3901_v13 }
 0x18a   : > { %v1341_v27 = vsub.f32 1.5, %v1340_v46 }
 0x18b   : > { %v2820_v11 = vpop.eup %2819  ;;  %v3941_v39 = vadd.f32 1e-05, %v1185_v48  ;;  %v1489_v58 = vadd.f32 %v3740_v63, %v1452_v19  ;;  %v1490_v33 = vadd.f32 %v3742_v3, %v1453_v59 }
 0x18c   : > { %v1031_v60 = vpop.xlane.xlu2 %1030  ;;  %v1342_v2 = vmul.f32 %v2818_v10, %v1341_v27  ;;  %v1348_v21 = vmul.f32 %v2820_v11, %v3919_v61  ;;  %vm1354_vm6 = vweird.f32 %v2820_v11 }
 0x18d   : > { %v3945_v9 = vmul.f32 %v3646_v57, %v1031_v60  ;;  %2821 = vrsqrt.f32 %v3941_v39  ;;  %1645 = vmatmul.f32.gmra.mxu0 %v1519_v49  ;;  %1710 = vmatmul.f32.gmra.mxu1 %v1520_v29  ;;  %v1521_v62 = vmax.f32 %v1489_v58, 0.0  ;;  %v1522_v34 = vmax.f32 %v1490_v33, 0.0  ;;  %vm1355_vm7 = vmor %vm1353_vm5, %vm1354_vm6 }
 0x18e   : > { %v1134_v22 = vpop.xlane.xlu0 %1133  ;;  %v1349_v43 = vmul.f32 %v2820_v11, %v1348_v21  ;;  %1775 = vmatmul.f32.gmra.mxu2 %v1519_v49  ;;  %1840 = vmatmul.f32.gmra.mxu3 %v1520_v29  ;;  %v1346_v12 = vsel %vm1345_vm4, %v2818_v10, %v1342_v2  ;;  %vm1363_vm8 = vweird.f32 %v3941_v39 }
 0x18f   : > { %v1170_v23 = vmul.f32 %v3945_v9, %v3945_v9  ;;  %v1154_v52 = vmul.f32 %v1134_v22, %v3646_v57  ;;  %v1417_v44 = vmul.f32 %v1346_v12, %v1209_v8  ;;  %v1418_v1 = vmul.f32 %v1346_v12, %v1210_v26 }
 0x190   : > { %v1350_v0 = vmul.f32 0.5, %v1349_v43  ;;  %v1213_v8 = vsub.f32 %v3593_v31, %v3924_v14  ;;  %v1214_v26 = vsub.f32 %v3596_v32, %v3924_v14 }
 0x191   : > { %v1186_v47 = vsub.f32 %v1154_v52, %v1170_v23  ;;  %v1454_v45 = vmul.f32 %v3730_v38, %v1417_v44  ;;  %v1455_v28 = vmul.f32 %v3734_v41, %v1418_v1 }
 0x192   : > { %v1351_v4 = vsub.f32 1.5, %v1350_v0 }
 0x193   : > { %v2822_v37 = vpop.eup %2821  ;;  %v3963_v25 = vadd.f32 1e-05, %v1186_v47  ;;  %v1491_v46 = vadd.f32 %v3740_v63, %v1454_v45  ;;  %v1492_v61 = vadd.f32 %v3742_v3, %v1455_v28 }
 0x194   : > { %v1034_v17 = vpop.xlane.xlu1 %1033  ;;  %v1352_v36 = vmul.f32 %v2820_v11, %v1351_v4  ;;  %v1358_v50 = vmul.f32 %v2822_v37, %v3941_v39  ;;  %vm1364_vm9 = vweird.f32 %v2822_v37 }
 0x195   : > { %v3968_v10 = vmul.f32 %v3646_v57, %v1034_v17  ;;  %2823 = vrsqrt.f32 %v3963_v25  ;;  %1648 = vmatmul.f32.gmra.mxu0 %v1521_v62  ;;  %1713 = vmatmul.f32.gmra.mxu1 %v1522_v34  ;;  %v1523_v21 = vmax.f32 %v1491_v46, 0.0  ;;  %v1524_v43 = vmax.f32 %v1492_v61, 0.0  ;;  %vm1365_vm10 = vmor %vm1363_vm8, %vm1364_vm9 }
 0x196   : > { %v1137_v5 = vpop.xlane.xlu2 %1136  ;;  %v1359_v35 = vmul.f32 %v2822_v37, %v1358_v50  ;;  %1778 = vmatmul.f32.gmra.mxu2 %v1521_v62  ;;  %1843 = vmatmul.f32.gmra.mxu3 %v1522_v34  ;;  %v1356_v20 = vsel %vm1355_vm7, %v2820_v11, %v1352_v36  ;;  %vm1373_vm11 = vweird.f32 %v3963_v25 }
 0x197   : > { %v1155_v18 = vmul.f32 %v1137_v5, %v3646_v57  ;;  %v1171_v24 = vmul.f32 %v3968_v10, %v3968_v10  ;;  %v1419_v6 = vmul.f32 %v1356_v20, %v1211_v40  ;;  %v1420_v42 = vmul.f32 %v1356_v20, %v1212_v51 }
 0x198   : > { %v1360_v48 = vmul.f32 0.5, %v1359_v35  ;;  %v1216_v5 = vsub.f32 %v3608_v56, %v3945_v9  ;;  %v1217_v56 = vsub.f32 %v3617_v15, %v3968_v10  ;;  %v1218_v61 = vsub.f32 %v3620_v16, %v3968_v10 }
 0x199   : > { %v1187_v27 = vsub.f32 %v1155_v18, %v1171_v24  ;;  %v1456_v11 = vmul.f32 %v3730_v38, %v1419_v6  ;;  %v1457_v59 = vmul.f32 %v3734_v41, %v1420_v42 }
 0x19a   : > { %v1361_v30 = vsub.f32 1.5, %v1360_v48 }
 0x19b   : > { %v2824_v60 = vpop.eup %2823  ;;  %v3985_v49 = vadd.f32 1e-05, %v1187_v27  ;;  %v1493_v58 = vadd.f32 %v3740_v63, %v1456_v11  ;;  %v1494_v44 = vadd.f32 %v3742_v3, %v1457_v59 }
 0x19c   : > { %v1037_v2 = vpop.xlane.xlu0 %1036  ;;  %v1362_v19 = vmul.f32 %v2822_v37, %v1361_v30  ;;  %v1368_v7 = vmul.f32 %v2824_v60, %v3963_v25  ;;  %vm1374_vm12 = vweird.f32 %v2824_v60 }
 0x19d   : > { %v3989_v13 = vmul.f32 %v3646_v57, %v1037_v2  ;;  %2825 = vrsqrt.f32 %v3985_v49  ;;  %1651 = vmatmul.f32.gmra.mxu0 %v1523_v21  ;;  %1716 = vmatmul.f32.gmra.mxu1 %v1524_v43  ;;  %v1525_v14 = vmax.f32 %v1493_v58, 0.0  ;;  %vm1375_vm13 = vmor %vm1373_vm11, %vm1374_vm12  ;;  %v1526_v36 = vmax.f32 %v1494_v44, 0.0 }
 0x19e   : > { %v1369_v22 = vmul.f32 %v2824_v60, %v1368_v7  ;;  %1781 = vmatmul.f32.gmra.mxu2 %v1523_v21  ;;  %v1140_v29 = vpop.xlane.xlu1 %1139  ;;  %1846 = vmatmul.f32.gmra.mxu3 %v1524_v43  ;;  %v1366_v12 = vsel %vm1365_vm10, %v2822_v37, %v1362_v19  ;;  %v1215_v37 = vsub.f32 %v3605_v55, %v3945_v9  ;;  %vm1383_vm14 = vweird.f32 %v3985_v49 }
 0x19f   : > { %v1156_v23 = vmul.f32 %v1140_v29, %v3646_v57  ;;  %v1172_v52 = vmul.f32 %v3989_v13, %v3989_v13  ;;  %v1421_v47 = vmul.f32 %v1366_v12, %v1213_v8  ;;  %v1422_v4 = vmul.f32 %v1366_v12, %v1214_v26 }
 0x1a0   : > { %v1370_v0 = vmul.f32 0.5, %v1369_v22  ;;  %v1219_v16 = vsub.f32 %v3641_v53, %v3989_v13  ;;  %v1220_v29 = vsub.f32 %v3644_v54, %v3989_v13 }
 0x1a1   : > { %v1188_v31 = vsub.f32 %v1156_v23, %v1172_v52  ;;  %v1458_v45 = vmul.f32 %v3730_v38, %v1421_v47  ;;  %v1459_v50 = vmul.f32 %v3734_v41, %v1422_v4  ;;  %v1599_v47 = vld [vmem:[#allocation7] sm:$0x3] }
 0x1a2   : > { %v1371_v39 = vsub.f32 1.5, %v1370_v0 }
 0x1a3   : > { %v2826_v33 = vpop.eup %2825  ;;  %v1236_v1 = vadd.f32 1e-05, %v1188_v31  ;;  %v1495_v34 = vadd.f32 %v3740_v63, %v1458_v45  ;;  %v1496_v40 = vadd.f32 %v3742_v3, %v1459_v50 }
 0x1a4   : > { %v1372_v17 = vmul.f32 %v2824_v60, %v1371_v39  ;;  %v1378_v32 = vmul.f32 %v2826_v33, %v3985_v49  ;;  %vm1384_vm15 = vweird.f32 %v2826_v33  ;;  %v4037_v39 = vperm.slane %v1599_v47, 0 }
 0x1a5   : > { %2827 = vrsqrt.f32 %v1236_v1  ;;  %1654 = vmatmul.f32.gmra.mxu0 %v1525_v14  ;;  %1719 = vmatmul.f32.gmra.mxu1 %v1526_v36  ;;  %v1527_v48 = vmax.f32 %v1495_v34, 0.0  ;;  %vm1385_vm0 = vmor %vm1383_vm14, %vm1384_vm15  ;;  %v1528_v27 = vmax.f32 %v1496_v40, 0.0  ;;  %vm1393_vm1 = vweird.f32 %v1236_v1 }
 0x1a6   : > { %v1379_v25 = vmul.f32 %v2826_v33, %v1378_v32  ;;  %1784 = vmatmul.f32.gmra.mxu2 %v1525_v14  ;;  %v1376_v62 = vsel %vm1375_vm13, %v2824_v60, %v1372_v17  ;;  %1849 = vmatmul.f32.gmra.mxu3 %v1526_v36 }
 0x1a7   : > { %v1423_v28 = vmul.f32 %v1376_v62, %v1215_v37  ;;  %v1424_v18 = vmul.f32 %v1376_v62, %v1216_v5 }
 0x1a8   : > { %v1380_v35 = vmul.f32 0.5, %v1379_v25 }
 0x1a9   : > { %v1460_v20 = vmul.f32 %v3730_v38, %v1423_v28  ;;  %v1461_v6 = vmul.f32 %v3734_v41, %v1424_v18 }
 0x1aa   : > { %v1381_v55 = vsub.f32 1.5, %v1380_v35 }
 0x1ab   : > { %v2828_v24 = vpop.eup %2827  ;;  %v1497_v60 = vadd.f32 %v3740_v63, %v1460_v20  ;;  %v1498_v15 = vadd.f32 %v3742_v3, %v1461_v6 }
 0x1ac   : > { %v1382_v46 = vmul.f32 %v2826_v33, %v1381_v55  ;;  %v1388_v51 = vmul.f32 %v2828_v24, %v1236_v1  ;;  %vm1394_vm2 = vweird.f32 %v2828_v24 }
 0x1ad   : > { %1657 = vmatmul.f32.gmra.mxu0 %v1527_v48  ;;  %1722 = vmatmul.f32.gmra.mxu1 %v1528_v27  ;;  %v1529_v7 = vmax.f32 %v1497_v60, 0.0  ;;  %vm1395_vm3 = vmor %vm1393_vm1, %vm1394_vm2  ;;  %v1530_v10 = vmax.f32 %v1498_v15, 0.0 }
 0x1ae   : > { %v1389_v9 = vmul.f32 %v2828_v24, %v1388_v51  ;;  %1787 = vmatmul.f32.gmra.mxu2 %v1527_v48  ;;  %v1386_v30 = vsel %vm1385_vm0, %v2826_v33, %v1382_v46  ;;  %1852 = vmatmul.f32.gmra.mxu3 %v1528_v27 }
 0x1af   : > { %v1425_v49 = vmul.f32 %v1386_v30, %v1217_v56  ;;  %v1426_v21 = vmul.f32 %v1386_v30, %v1218_v61 }
 0x1b0   : > { %v1390_v42 = vmul.f32 0.5, %v1389_v9 }
 0x1b1   : > { %v1462_v11 = vmul.f32 %v3730_v38, %v1425_v49  ;;  %v1463_v22 = vmul.f32 %v3734_v41, %v1426_v21 }
 0x1b2   : > { %v1391_v2 = vsub.f32 1.5, %v1390_v42 }
 0x1b3   : > { %v1499_v59 = vadd.f32 %v3740_v63, %v1462_v11  ;;  %v1500_v23 = vadd.f32 %v3742_v3, %v1463_v22 }
 0x1b4   : > { %v1392_v19 = vmul.f32 %v2828_v24, %v1391_v2 }
 0x1b5   : > { %1660 = vmatmul.f32.gmra.mxu0 %v1529_v7  ;;  %1725 = vmatmul.f32.gmra.mxu1 %v1530_v10  ;;  %v1531_v26 = vmax.f32 %v1499_v59, 0.0  ;;  %v1532_v0 = vmax.f32 %v1500_v23, 0.0 }
 0x1b6   : > { %1790 = vmatmul.f32.gmra.mxu2 %v1529_v7  ;;  %v1396_v43 = vsel %vm1395_vm3, %v2828_v24, %v1392_v19  ;;  %1855 = vmatmul.f32.gmra.mxu3 %v1530_v10 }
 0x1b7   : > { %v1427_v8 = vmul.f32 %v1396_v43, %v1219_v16  ;;  %v1428_v52 = vmul.f32 %v1396_v43, %v1220_v29 }
 0x1b9   : > { %v1464_v53 = vmul.f32 %v3730_v38, %v1427_v8  ;;  %v1465_v58 = vmul.f32 %v3734_v41, %v1428_v52  ;;  %v4040_v41 = vperm.slane %v1599_v47, 1 }
 0x1bb   : > { %v1501_v54 = vadd.f32 %v3740_v63, %v1464_v53  ;;  %v1502_v13 = vadd.f32 %v3742_v3, %v1465_v58 }
 0x1bd   : > { %1663 = vmatmul.f32.gmra.mxu0 %v1531_v26  ;;  %1728 = vmatmul.f32.gmra.mxu1 %v1532_v0  ;;  %v1533_v12 = vmax.f32 %v1501_v54, 0.0  ;;  %v1534_v31 = vmax.f32 %v1502_v13, 0.0 }
 0x1be   : > { %1793 = vmatmul.f32.gmra.mxu2 %v1531_v26  ;;  %1858 = vmatmul.f32.gmra.mxu3 %v1532_v0 }
 0x1c5   : > { %1666 = vmatmul.f32.gmra.mxu0 %v1533_v12  ;;  %1731 = vmatmul.f32.gmra.mxu1 %v1534_v31 }
 0x1c6   : > { %1796 = vmatmul.f32.gmra.mxu2 %v1533_v12  ;;  %1861 = vmatmul.f32.gmra.mxu3 %v1534_v31 }
 0x1ca   : > { %v1622_v38 = vpop.f32.mrf.mxu0  ;;  %v1687_v44 = vpop.f32.mrf.mxu1 }
 0x1cb   : > { %v1623_v4 = vadd.f32 %v1622_v38, %v4037_v39 }
 0x1cd   : > { %v4042_v63 = vadd.f32 %v1687_v44, %v1623_v4 }
 0x1cf   : > { %v1931_v25 = vmul.f32 %v4042_v63, %v4042_v63 }
 0x1d1   : > { %v1752_v33 = vpop.f32.mrf.mxu2  ;;  %v1817_v1 = vpop.f32.mrf.mxu3 }
 0x1d2   : > { %v1753_v3 = vadd.f32 %v1752_v33, %v4040_v41  ;;  %v1625_v17 = vpop.f32.mrf.mxu0  ;;  %v1690_v14 = vpop.f32.mrf.mxu1 }
 0x1d3   : > { %v1626_v45 = vadd.f32 %v1625_v17, %v4037_v39 }
 0x1d4   : > { %v4045_v32 = vadd.f32 %v1817_v1, %v1753_v3 }
 0x1d5   : > { %v4054_v5 = vadd.f32 %v1690_v14, %v1626_v45 }
 0x1d6   : > { %v1867_v37 = vadd.f32 %v4045_v32, %v4042_v63  ;;  %v1932_v36 = vmul.f32 %v4045_v32, %v4045_v32 }
 0x1d7   : > { %v1933_v24 = vmul.f32 %v4054_v5, %v4054_v5 }
 0x1d8   : > { %1868 = vadd.xlane.f32.xlu2 %v1867_v37  ;;  %v1963_v50 = vadd.f32 %v1932_v36, %v1931_v25 }
 0x1d9   : > { %v1755_v62 = vpop.f32.mrf.mxu2  ;;  %v1820_v34 = vpop.f32.mrf.mxu3 }
 0x1da   : > { %v1756_v35 = vadd.f32 %v1755_v62, %v4040_v41  ;;  %1964 = vadd.xlane.f32.xlu0 %v1963_v50  ;;  %v1628_v28 = vpop.f32.mrf.mxu0  ;;  %v1693_v40 = vpop.f32.mrf.mxu1 }
 0x1db   : > { %v1629_v18 = vadd.f32 %v1628_v28, %v4037_v39 }
 0x1dc   : > { %v4057_v55 = vadd.f32 %v1820_v34, %v1756_v35 }
 0x1dd   : > { %v4066_v56 = vadd.f32 %v1693_v40, %v1629_v18 }
 0x1de   : > { %v1934_v46 = vmul.f32 %v4057_v55, %v4057_v55  ;;  %v1870_v48 = vadd.f32 %v4057_v55, %v4054_v5 }
 0x1df   : > { %v1935_v60 = vmul.f32 %v4066_v56, %v4066_v56 }
 0x1e0   : > { %v1966_v51 = vadd.f32 %v1934_v46, %v1933_v24 }
 0x1e1   : > { %v1758_v20 = vpop.f32.mrf.mxu2  ;;  %v1823_v27 = vpop.f32.mrf.mxu3 }
 0x1e2   : > { %v1759_v9 = vadd.f32 %v1758_v20, %v4040_v41  ;;  %1967 = vadd.xlane.f32.xlu1 %v1966_v51  ;;  %1871 = vadd.xlane.f32.xlu0 %v1870_v48  ;;  %v1631_v6 = vpop.f32.mrf.mxu0  ;;  %v1696_v61 = vpop.f32.mrf.mxu1 }
 0x1e3   : > { %v1632_v42 = vadd.f32 %v1631_v6, %v4037_v39 }
 0x1e4   : > { %v4069_v30 = vadd.f32 %v1823_v27, %v1759_v9 }
 0x1e5   : > { %v4078_v19 = vadd.f32 %v1696_v61, %v1632_v42 }
 0x1e6   : > { %v1936_v49 = vmul.f32 %v4069_v30, %v4069_v30  ;;  %v1873_v2 = vadd.f32 %v4069_v30, %v4066_v56 }
 0x1e7   : > { %v1937_v29 = vmul.f32 %v4078_v19, %v4078_v19 }
 0x1e8   : > { %v1969_v15 = vadd.f32 %v1936_v49, %v1935_v60 }
 0x1e9   : > { %v1761_v21 = vpop.f32.mrf.mxu2  ;;  %v1826_v11 = vpop.f32.mrf.mxu3 }
 0x1ea   : > { %v1762_v7 = vadd.f32 %v1761_v21, %v4040_v41  ;;  %1874 = vadd.xlane.f32.xlu1 %v1873_v2  ;;  %1970 = vadd.xlane.f32.xlu2 %v1969_v15  ;;  %v1634_v16 = vpop.f32.mrf.mxu0  ;;  %v1699_v22 = vpop.f32.mrf.mxu1 }
 0x1eb   : > { %v1635_v43 = vadd.f32 %v1634_v16, %v4037_v39 }
 0x1ec   : > { %v4081_v10 = vadd.f32 %v1826_v11, %v1762_v7 }
 0x1ed   : > { %v4090_v26 = vadd.f32 %v1699_v22, %v1635_v43 }
 0x1ee   : > { %v1938_v59 = vmul.f32 %v4081_v10, %v4081_v10  ;;  %v1876_v23 = vadd.f32 %v4081_v10, %v4078_v19 }
 0x1ef   : > { %v1939_v31 = vmul.f32 %v4090_v26, %v4090_v26 }
 0x1f0   : > { %v1972_v8 = vadd.f32 %v1938_v59, %v1937_v29 }
 0x1f1   : > { %v1764_v52 = vpop.f32.mrf.mxu2  ;;  %v1829_v0 = vpop.f32.mrf.mxu3 }
 0x1f2   : > { %v1765_v53 = vadd.f32 %v1764_v52, %v4040_v41  ;;  %1973 = vadd.xlane.f32.xlu0 %v1972_v8  ;;  %1877 = vadd.xlane.f32.xlu2 %v1876_v23  ;;  %v1637_v58 = vpop.f32.mrf.mxu0  ;;  %v1702_v13 = vpop.f32.mrf.mxu1 }
 0x1f3   : > { %v1638_v12 = vadd.f32 %v1637_v58, %v4037_v39 }
 0x1f4   : > { %v4093_v54 = vadd.f32 %v1829_v0, %v1765_v53 }
 0x1f5   : > { %v4102_v33 = vadd.f32 %v1702_v13, %v1638_v12 }
 0x1f6   : > { %v1940_v47 = vmul.f32 %v4093_v54, %v4093_v54  ;;  %v1879_v44 = vadd.f32 %v4093_v54, %v4090_v26 }
 0x1f7   : > { %v1941_v25 = vmul.f32 %v4102_v33, %v4102_v33 }
 0x1f8   : > { %v1975_v38 = vadd.f32 %v1940_v47, %v1939_v31 }
 0x1f9   : > { %v1767_v4 = vpop.f32.mrf.mxu2  ;;  %v1832_v3 = vpop.f32.mrf.mxu3 }
 0x1fa   : > { %v1768_v1 = vadd.f32 %v1767_v4, %v4040_v41  ;;  %1976 = vadd.xlane.f32.xlu1 %v1975_v38  ;;  %1880 = vadd.xlane.f32.xlu0 %v1879_v44  ;;  %v1640_v17 = vpop.f32.mrf.mxu0  ;;  %v1705_v45 = vpop.f32.mrf.mxu1 }
 0x1fb   : > { %v1641_v37 = vadd.f32 %v1640_v17, %v4037_v39 }
 0x1fc   : > { %v4105_v14 = vadd.f32 %v1832_v3, %v1768_v1 }
 0x1fd   : > { %v4114_v34 = vadd.f32 %v1705_v45, %v1641_v37 }
 0x1fe   : > { %v1942_v36 = vmul.f32 %v4105_v14, %v4105_v14  ;;  %v1882_v62 = vadd.f32 %v4105_v14, %v4102_v33 }
 0x1ff   : > { %v1943_v48 = vmul.f32 %v4114_v34, %v4114_v34 }
 0x200   : > { %v1978_v50 = vadd.f32 %v1942_v36, %v1941_v25 }
 0x201   : > { %v1770_v35 = vpop.f32.mrf.mxu2  ;;  %v1835_v40 = vpop.f32.mrf.mxu3 }
 0x202   : > { %v1771_v28 = vadd.f32 %v1770_v35, %v4040_v41  ;;  %1979 = vadd.xlane.f32.xlu2 %v1978_v50  ;;  %1883 = vadd.xlane.f32.xlu1 %v1882_v62  ;;  %v1643_v18 = vpop.f32.mrf.mxu0  ;;  %v1708_v46 = vpop.f32.mrf.mxu1 }
 0x203   : > { %v1644_v51 = vadd.f32 %v1643_v18, %v4037_v39 }
 0x204   : > { %v4117_v24 = vadd.f32 %v1835_v40, %v1771_v28 }
 0x205   : > { %v4126_v61 = vadd.f32 %v1708_v46, %v1644_v51 }
 0x206   : > { %v1944_v20 = vmul.f32 %v4117_v24, %v4117_v24  ;;  %v1885_v27 = vadd.f32 %v4117_v24, %v4114_v34 }
 0x207   : > { %v1945_v7 = vmul.f32 %v4126_v61, %v4126_v61 }
 0x208   : > { %v1981_v9 = vadd.f32 %v1944_v20, %v1943_v48 }
 0x209   : > { %v1773_v6 = vpop.f32.mrf.mxu2  ;;  %v1838_v60 = vpop.f32.mrf.mxu3 }
 0x20a   : > { %v1774_v42 = vadd.f32 %v1773_v6, %v4040_v41  ;;  %1982 = vadd.xlane.f32.xlu0 %v1981_v9  ;;  %1886 = vadd.xlane.f32.xlu2 %v1885_v27  ;;  %v1646_v49 = vpop.f32.mrf.mxu0  ;;  %v1711_v15 = vpop.f32.mrf.mxu1 }
 0x20b   : > { %v1647_v21 = vadd.f32 %v1646_v49, %v4037_v39 }
 0x20c   : > { %v4129_v2 = vadd.f32 %v1838_v60, %v1774_v42 }
 0x20d   : > { %v4138_v29 = vadd.f32 %v1711_v15, %v1647_v21 }
 0x20e   : > { %v1946_v11 = vmul.f32 %v4129_v2, %v4129_v2  ;;  %v1888_v22 = vadd.f32 %v4129_v2, %v4126_v61 }
 0x20f   : > { %v1947_v58 = vmul.f32 %v4138_v29, %v4138_v29 }
 0x210   : > { %v1984_v16 = vadd.f32 %v1946_v11, %v1945_v7 }
 0x211   : > { %v1776_v43 = vpop.f32.mrf.mxu2  ;;  %v1841_v8 = vpop.f32.mrf.mxu3 }
 0x212   : > { %v1777_v59 = vadd.f32 %v1776_v43, %v4040_v41  ;;  %1985 = vadd.xlane.f32.xlu1 %v1984_v16  ;;  %1889 = vadd.xlane.f32.xlu0 %v1888_v22  ;;  %v1649_v23 = vpop.f32.mrf.mxu0  ;;  %v1714_v53 = vpop.f32.mrf.mxu1 }
 0x213   : > { %v1650_v0 = vadd.f32 %v1649_v23, %v4037_v39 }
 0x214   : > { %v4141_v52 = vadd.f32 %v1841_v8, %v1777_v59 }
 0x215   : > { %v4150_v38 = vadd.f32 %v1714_v53, %v1650_v0 }
 0x216   : > { %v1948_v13 = vmul.f32 %v4141_v52, %v4141_v52  ;;  %v1891_v31 = vadd.f32 %v4141_v52, %v4138_v29 }
 0x217   : > { %v1949_v37 = vmul.f32 %v4150_v38, %v4150_v38 }
 0x218   : > { %v1987_v12 = vadd.f32 %v1948_v13, %v1947_v58 }
 0x219   : > { %v1779_v47 = vpop.f32.mrf.mxu2  ;;  %v1844_v4 = vpop.f32.mrf.mxu3 }
 0x21a   : > { %v1780_v44 = vadd.f32 %v1779_v47, %v4040_v41  ;;  %1988 = vadd.xlane.f32.xlu2 %v1987_v12  ;;  %1892 = vadd.xlane.f32.xlu1 %v1891_v31  ;;  %v1652_v1 = vpop.f32.mrf.mxu0  ;;  %v1717_v17 = vpop.f32.mrf.mxu1 }
 0x21b   : > { %v1653_v45 = vadd.f32 %v1652_v1, %v4037_v39 }
 0x21c   : > { %v4153_v3 = vadd.f32 %v1844_v4, %v1780_v44 }
 0x21d   : > { %v4162_v35 = vadd.f32 %v1717_v17, %v1653_v45 }
 0x21e   : > { %v1950_v25 = vmul.f32 %v4153_v3, %v4153_v3  ;;  %v1894_v50 = vadd.f32 %v4153_v3, %v4150_v38 }
 0x21f   : > { %v1951_v20 = vmul.f32 %v4162_v35, %v4162_v35 }
 0x220   : > { %v1990_v36 = vadd.f32 %v1950_v25, %v1949_v37 }
 0x221   : > { %v1782_v62 = vpop.f32.mrf.mxu2  ;;  %v1847_v40 = vpop.f32.mrf.mxu3 }
 0x222   : > { %v1783_v28 = vadd.f32 %v1782_v62, %v4040_v41  ;;  %1991 = vadd.xlane.f32.xlu0 %v1990_v36  ;;  %1895 = vadd.xlane.f32.xlu2 %v1894_v50  ;;  %v1655_v18 = vpop.f32.mrf.mxu0  ;;  %v1720_v51 = vpop.f32.mrf.mxu1 }
 0x223   : > { %v1656_v48 = vadd.f32 %v1655_v18, %v4037_v39 }
 0x224   : > { %v4165_v46 = vadd.f32 %v1847_v40, %v1783_v28 }
 0x225   : > { %v4174_v60 = vadd.f32 %v1720_v51, %v1656_v48 }
 0x226   : > { %v1952_v9 = vmul.f32 %v4165_v46, %v4165_v46  ;;  %v1897_v6 = vadd.f32 %v4165_v46, %v4162_v35 }
 0x227   : > { %v1953_v22 = vmul.f32 %v4174_v60, %v4174_v60 }
 0x228   : > { %v1993_v27 = vadd.f32 %v1952_v9, %v1951_v20 }
 0x229   : > { %v1785_v42 = vpop.f32.mrf.mxu2  ;;  %v1850_v15 = vpop.f32.mrf.mxu3 }
 0x22a   : > { %v1786_v49 = vadd.f32 %v1785_v42, %v4040_v41  ;;  %1994 = vadd.xlane.f32.xlu1 %v1993_v27  ;;  %1898 = vadd.xlane.f32.xlu0 %v1897_v6  ;;  %v1658_v21 = vpop.f32.mrf.mxu0  ;;  %v1723_v11 = vpop.f32.mrf.mxu1 }
 0x22b   : > { %v1659_v16 = vadd.f32 %v1658_v21, %v4037_v39 }
 0x22c   : > { %v4177_v7 = vadd.f32 %v1850_v15, %v1786_v49 }
 0x22d   : > { %v4186_v53 = vadd.f32 %v1723_v11, %v1659_v16 }
 0x22e   : > { %v1954_v43 = vmul.f32 %v4177_v7, %v4177_v7  ;;  %v1900_v8 = vadd.f32 %v4177_v7, %v4174_v60 }
 0x22f   : > { %v1955_v47 = vmul.f32 %v4186_v53, %v4186_v53 }
 0x230   : > { %v1996_v59 = vadd.f32 %v1954_v43, %v1953_v22 }
 0x231   : > { %v1788_v23 = vpop.f32.mrf.mxu2  ;;  %v1853_v58 = vpop.f32.mrf.mxu3 }
 0x232   : > { %v1789_v0 = vadd.f32 %v1788_v23, %v4040_v41  ;;  %1997 = vadd.xlane.f32.xlu2 %v1996_v59  ;;  %1901 = vadd.xlane.f32.xlu1 %v1900_v8  ;;  %v1661_v13 = vpop.f32.mrf.mxu0  ;;  %v1726_v31 = vpop.f32.mrf.mxu1 }
 0x233   : > { %v1662_v45 = vadd.f32 %v1661_v13, %v4037_v39 }
 0x234   : > { %v4189_v12 = vadd.f32 %v1853_v58, %v1789_v0 }
 0x235   : > { %v4201_v62 = vadd.f32 %v1726_v31, %v1662_v45 }
 0x236   : > { %v1956_v44 = vmul.f32 %v4189_v12, %v4189_v12  ;;  %v1903_v1 = vadd.f32 %v4189_v12, %v4186_v53 }
 0x237   : > { %v1957_v0 = vmul.f32 %v4201_v62, %v4201_v62 }
 0x238   : > { %v1999_v4 = vadd.f32 %v1956_v44, %v1955_v47 }
 0x239   : > { %v1791_v17 = vpop.f32.mrf.mxu2  ;;  %v1856_v25 = vpop.f32.mrf.mxu3 }
 0x23a   : > { %v1792_v37 = vadd.f32 %v1791_v17, %v4040_v41  ;;  %2000 = vadd.xlane.f32.xlu0 %v1999_v4  ;;  %1904 = vadd.xlane.f32.xlu2 %v1903_v1  ;;  %v1664_v36 = vpop.f32.mrf.mxu0  ;;  %v1729_v40 = vpop.f32.mrf.mxu1 }
 0x23b   : > { %v1665_v28 = vadd.f32 %v1664_v36, %v4037_v39 }
 0x23c   : > { %v4199_v50 = vadd.f32 %v1856_v25, %v1792_v37 }
 0x23d   : > { %v4207_v9 = vadd.f32 %v1729_v40, %v1665_v28 }
 0x23e   : > { %v1906_v18 = vadd.f32 %v4199_v50, %v4201_v62  ;;  %v1958_v16 = vmul.f32 %v4199_v50, %v4199_v50 }
 0x23f   : > { %v1959_v36 = vmul.f32 %v4207_v9, %v4207_v9 }
 0x240   : > { %v2002_v31 = vadd.f32 %v1958_v16, %v1957_v0 }
 0x241   : > { %v1794_v51 = vpop.f32.mrf.mxu2  ;;  %v1859_v20 = vpop.f32.mrf.mxu3 }
 0x242   : > { %v1795_v48 = vadd.f32 %v1794_v51, %v4040_v41  ;;  %1907 = vadd.xlane.f32.xlu0 %v1906_v18  ;;  %v1667_v6 = vpop.f32.mrf.mxu0  ;;  %v1732_v21 = vpop.f32.mrf.mxu1 }
 0x243   : > { %v1668_v49 = vadd.f32 %v1667_v6, %v4037_v39 }
 0x244   : > { %v4209_v27 = vadd.f32 %v1859_v20, %v1795_v48 }
 0x245   : > { %v4217_v22 = vadd.f32 %v1732_v21, %v1668_v49 }
 0x246   : > { %v1909_v42 = vadd.f32 %v4209_v27, %v4207_v9  ;;  %v1960_v45 = vmul.f32 %v4209_v27, %v4209_v27 }
 0x247   : > { %v1961_v47 = vmul.f32 %v4217_v22, %v4217_v22 }
 0x248   : > { %1910 = vadd.xlane.f32.xlu1 %v1909_v42  ;;  %v2005_v40 = vadd.f32 %v1960_v45, %v1959_v36 }
 0x249   : > { %v1797_v15 = vpop.f32.mrf.mxu2  ;;  %v1862_v43 = vpop.f32.mrf.mxu3 }
 0x24a   : > { %v1798_v11 = vadd.f32 %v1797_v15, %v4040_v41 }
 0x24b   : > { %v1869_v59 = vpop.xlane.xlu2 %1868 }
 0x24c   : > { %v4219_v8 = vadd.f32 %v1862_v43, %v1798_v11  ;;  %v1915_v23 = vmul.f32 %v1869_v59, %v3646_v57 }
 0x24d   : > { %v1965_v39 = vpop.xlane.xlu0 %1964 }
 0x24e   : > { %v2027_v58 = vmul.f32 %v1915_v23, %v1915_v23  ;;  %v2011_v13 = vmul.f32 %v1965_v39, %v3646_v57  ;;  %v1912_v41 = vadd.f32 %v4219_v8, %v4217_v22  ;;  %v1962_v44 = vmul.f32 %v4219_v8, %v4219_v8  ;;  %v1865_v39 = vld [vmem:[#allocation8] sm:$0x3] }
 0x24f   : > { %v2060_v45 = vsub.f32 %v4045_v32, %v1915_v23 }
 0x250   : > { %v2043_v4 = vsub.f32 %v2011_v13, %v2027_v58  ;;  %2003 = vadd.xlane.f32.xlu1 %v2002_v31  ;;  %1913 = vadd.xlane.f32.xlu2 %v1912_v41  ;;  %v2008_v1 = vadd.f32 %v1962_v44, %v1961_v47  ;;  %v1866_v31 = vld [vmem:[#allocation10] sm:$0x3]  ;;  %v4249_v44 = vperm.slane %v1865_v39, 0 }
 0x252   : > { %v2091_v17 = vadd.f32 1e-05, %v2043_v4  ;;  %2009 = vadd.xlane.f32.xlu0 %v2008_v1  ;;  %v4251_v4 = vperm.slane %v1865_v39, 1  ;;  %v2059_v1 = vsub.f32 %v4042_v63, %v1915_v23  ;;  %v2405_v63 = vld [vmem:[%s4621_s11] sm:$0x3] }
 0x254   : > { %2829 = vrsqrt.f32 %v2091_v17  ;;  %vm2113_vm5 = vweird.f32 %v2091_v17 }
 0x255   : > { %v1968_v37 = vpop.xlane.xlu1 %1967  ;;  %v1872_v25 = vpop.xlane.xlu0 %1871 }
 0x256   : > { %v4236_v28 = vmul.f32 %v1872_v25, %v3646_v57  ;;  %v2012_v18 = vmul.f32 %v1968_v37, %v3646_v57 }
 0x258   : > { %v2028_v51 = vmul.f32 %v4236_v28, %v4236_v28  ;;  %2006 = vadd.xlane.f32.xlu2 %v2005_v40 }
 0x25a   : > { %v2830_v48 = vpop.eup %2829  ;;  %v2044_v20 = vsub.f32 %v2012_v18, %v2028_v51  ;;  %v4259_v18 = vperm.slane %v1866_v31, 0 }
 0x25b   : > { %v2108_v6 = vmul.f32 %v2830_v48, %v2091_v17  ;;  %vm2114_vm4 = vweird.f32 %v2830_v48 }
 0x25c   : > { %v2092_v42 = vadd.f32 1e-05, %v2044_v20  ;;  %vm2115_vm6 = vmor %vm2113_vm5, %vm2114_vm4 }
 0x25d   : > { %v2109_v49 = vmul.f32 %v2830_v48, %v2108_v6  ;;  %v1875_v15 = vpop.xlane.xlu1 %1874  ;;  %v1971_v21 = vpop.xlane.xlu2 %1970 }
 0x25e   : > { %2831 = vrsqrt.f32 %v2092_v42  ;;  %v4242_v11 = vmul.f32 %v1875_v15, %v3646_v57  ;;  %v2013_v59 = vmul.f32 %v1971_v21, %v3646_v57  ;;  %vm2123_vm8 = vweird.f32 %v2092_v42 }
 0x25f   : > { %v2110_v16 = vmul.f32 0.5, %v2109_v49  ;;  %v4261_v49 = vperm.slane %v1866_v31, 1  ;;  %v4277_v31 = vperm.slane %v2405_v63, 1 }
 0x260   : > { %v2029_v43 = vmul.f32 %v4242_v11, %v4242_v11 }
 0x261   : > { %v2111_v0 = vsub.f32 1.5, %v2110_v16 }
 0x262   : > { %v2045_v58 = vsub.f32 %v2013_v59, %v2029_v43  ;;  %v4271_v43 = vperm.slane %v2405_v63, 0 }
 0x263   : > { %v2112_v13 = vmul.f32 %v2830_v48, %v2111_v0 }
 0x264   : > { %v2832_v41 = vpop.eup %2831  ;;  %v4247_v47 = vadd.f32 1e-05, %v2045_v58 }
 0x265   : > { %v2116_v37 = vsel %vm2115_vm6, %v2830_v48, %v2112_v13  ;;  %v2118_v25 = vmul.f32 %v2832_v41, %v2092_v42  ;;  %v1878_v36 = vpop.xlane.xlu2 %1877  ;;  %v1974_v40 = vpop.xlane.xlu0 %1973  ;;  %vm2124_vm7 = vweird.f32 %v2832_v41 }
 0x266   : > { %2833 = vrsqrt.f32 %v4247_v47  ;;  %v4257_v17 = vmul.f32 %v1878_v36, %v3646_v57  ;;  %v2267_v20 = vmul.f32 %v2116_v37, %v2059_v1  ;;  %v2268_v6 = vmul.f32 %v2116_v37, %v2060_v45  ;;  %vm2125_vm9 = vmor %vm2123_vm8, %vm2124_vm7 }
 0x267   : > { %v2119_v51 = vmul.f32 %v2832_v41, %v2118_v25  ;;  %v2014_v23 = vmul.f32 %v1974_v40, %v3646_v57  ;;  %v2061_v40 = vsub.f32 %v4054_v5, %v4236_v28  ;;  %vm2133_vm11 = vweird.f32 %v4247_v47 }
 0x268   : > { %v2030_v32 = vmul.f32 %v4257_v17, %v4257_v17  ;;  %v2304_v15 = vmul.f32 %v4249_v44, %v2267_v20  ;;  %v2305_v21 = vmul.f32 %v4251_v4, %v2268_v6 }
 0x269   : > { %v2120_v48 = vmul.f32 0.5, %v2119_v51  ;;  %v2062_v51 = vsub.f32 %v4057_v55, %v4236_v28 }
 0x26a   : > { %v2046_v16 = vsub.f32 %v2014_v23, %v2030_v32  ;;  %v2341_v0 = vadd.f32 %v4259_v18, %v2304_v15  ;;  %v2342_v39 = vadd.f32 %v4261_v49, %v2305_v21 }
 0x26b   : > { %v2121_v59 = vsub.f32 1.5, %v2120_v48 }
 0x26c   : > { %v2834_v58 = vpop.eup %2833  ;;  %v4275_v13 = vadd.f32 1e-05, %v2046_v16  ;;  %v2373_v36 = vmax.f32 %v2341_v0, 0.0  ;;  %v2374_v42 = vmax.f32 %v2342_v39, 0.0 }
 0x26d   : > { %v2122_v1 = vmul.f32 %v2832_v41, %v2121_v59  ;;  %v2128_v45 = vmul.f32 %v2834_v58, %v4247_v47  ;;  %v1977_v37 = vpop.xlane.xlu1 %1976  ;;  %v1881_v25 = vpop.xlane.xlu0 %1880  ;;  %vm2134_vm10 = vweird.f32 %v2834_v58 }
 0x26e   : > { %2835 = vrsqrt.f32 %v4275_v13  ;;  %v4286_v20 = vmul.f32 %v1881_v25, %v3646_v57  ;;  %v2411_v32 = vmul.f32 %v4271_v43, %v2373_v36  ;;  %v2015_v15 = vmul.f32 %v1977_v37, %v3646_v57  ;;  %vm2135_vm12 = vmor %vm2133_vm11, %vm2134_vm10 }
 0x26f   : > { %v2126_v6 = vsel %vm2125_vm9, %v2832_v41, %v2122_v1  ;;  %v2129_v63 = vmul.f32 %v2834_v58, %v2128_v45  ;;  %v2412_v55 = vmul.f32 %v4277_v31, %v2374_v42  ;;  %vm2143_vm14 = vweird.f32 %v4275_v13 }
 0x270   : > { %v2269_v23 = vmul.f32 %v2126_v6, %v2061_v40  ;;  %v2270_v48 = vmul.f32 %v2126_v6, %v2062_v51  ;;  %v2031_v5 = vmul.f32 %v4286_v20, %v4286_v20  ;;  %v2063_v6 = vsub.f32 %v4066_v56, %v4242_v11 }
 0x271   : > { %v2130_v21 = vmul.f32 0.5, %v2129_v63  ;;  %v2443_v0 = vadd.f32 %v2412_v55, %v2411_v32  ;;  %v2064_v63 = vsub.f32 %v4069_v30, %v4242_v11 }
 0x272   : > { %v2047_v28 = vsub.f32 %v2015_v15, %v2031_v5  ;;  %v2306_v16 = vmul.f32 %v4249_v44, %v2269_v23  ;;  %v2307_v59 = vmul.f32 %v4251_v4, %v2270_v48 }
 0x273   : > { %v2131_v41 = vsub.f32 1.5, %v2130_v21  ;;  %2444 = vadd.xlane.f32.xlu1 %v2443_v0 }
 0x274   : > { %v2836_v39 = vpop.eup %2835  ;;  %v4295_v1 = vadd.f32 1e-05, %v2047_v28  ;;  %v2343_v45 = vadd.f32 %v4259_v18, %v2306_v16  ;;  %v2344_v37 = vadd.f32 %v4261_v49, %v2307_v59 }
 0x275   : > { %v2132_v25 = vmul.f32 %v2834_v58, %v2131_v41  ;;  %v2138_v36 = vmul.f32 %v2836_v39, %v4275_v13  ;;  %v1980_v40 = vpop.xlane.xlu2 %1979  ;;  %v1884_v51 = vpop.xlane.xlu1 %1883  ;;  %vm2144_vm13 = vweird.f32 %v2836_v39 }
 0x276   : > { %2837 = vrsqrt.f32 %v4295_v1  ;;  %v4307_v42 = vmul.f32 %v1884_v51, %v3646_v57  ;;  %v2375_v47 = vmax.f32 %v2343_v45, 0.0  ;;  %v2376_v48 = vmax.f32 %v2344_v37, 0.0  ;;  %vm2145_vm15 = vmor %vm2143_vm14, %vm2144_vm13 }
 0x277   : > { %v2136_v32 = vsel %vm2135_vm12, %v2834_v58, %v2132_v25  ;;  %v2139_v23 = vmul.f32 %v2836_v39, %v2138_v36  ;;  %v2016_v15 = vmul.f32 %v1980_v40, %v3646_v57  ;;  %vm2153_vm1 = vweird.f32 %v4295_v1 }
 0x278   : > { %v2032_v5 = vmul.f32 %v4307_v42, %v4307_v42  ;;  %v2271_v21 = vmul.f32 %v2136_v32, %v2063_v6  ;;  %v2413_v55 = vmul.f32 %v4271_v43, %v2375_v47  ;;  %v2414_v30 = vmul.f32 %v4277_v31, %v2376_v48 }
 0x279   : > { %v2140_v56 = vmul.f32 0.5, %v2139_v23  ;;  %v2272_v11 = vmul.f32 %v2136_v32, %v2064_v63  ;;  %v2065_v63 = vsub.f32 %v4078_v19, %v4257_v17  ;;  %v2066_v32 = vsub.f32 %v4081_v10, %v4257_v17 }
 0x27a   : > { %v2048_v28 = vsub.f32 %v2016_v15, %v2032_v5  ;;  %v2308_v16 = vmul.f32 %v4249_v44, %v2271_v21  ;;  %v2446_v58 = vadd.f32 %v2414_v30, %v2413_v55 }
 0x27b   : > { %v2141_v59 = vsub.f32 1.5, %v2140_v56  ;;  %v2309_v41 = vmul.f32 %v4251_v4, %v2272_v11 }
 0x27c   : > { %v2838_v0 = vpop.eup %2837  ;;  %v4316_v45 = vadd.f32 1e-05, %v2048_v28  ;;  %v2345_v37 = vadd.f32 %v4259_v18, %v2308_v16  ;;  %2447 = vadd.xlane.f32.xlu2 %v2446_v58 }
 0x27d   : > { %v2142_v25 = vmul.f32 %v2836_v39, %v2141_v59  ;;  %v2148_v36 = vmul.f32 %v2838_v0, %v4295_v1  ;;  %v1887_v40 = vpop.xlane.xlu2 %1886  ;;  %v1983_v51 = vpop.xlane.xlu0 %1982  ;;  %v2346_v6 = vadd.f32 %v4261_v49, %v2309_v41  ;;  %vm2154_vm0 = vweird.f32 %v2838_v0 }
 0x27e   : > { %2839 = vrsqrt.f32 %v4316_v45  ;;  %v4329_v23 = vmul.f32 %v1887_v40, %v3646_v57  ;;  %v2377_v48 = vmax.f32 %v2345_v37, 0.0  ;;  %v2017_v21 = vmul.f32 %v1983_v51, %v3646_v57  ;;  %vm2155_vm2 = vmor %vm2153_vm1, %vm2154_vm0 }
 0x27f   : > { %v2146_v13 = vsel %vm2145_vm15, %v2836_v39, %v2142_v25  ;;  %v2149_v47 = vmul.f32 %v2838_v0, %v2148_v36  ;;  %v2378_v15 = vmax.f32 %v2346_v6, 0.0  ;;  %v2067_v6 = vsub.f32 %v4090_v26, %v4286_v20 }
 0x280   : > { %v2033_v5 = vmul.f32 %v4329_v23, %v4329_v23  ;;  %v2273_v19 = vmul.f32 %v2146_v13, %v2065_v63  ;;  %v2415_v10 = vmul.f32 %v4271_v43, %v2377_v48  ;;  %v2274_v55 = vmul.f32 %v2146_v13, %v2066_v32 }
 0x281   : > { %v2150_v56 = vmul.f32 0.5, %v2149_v47  ;;  %v2416_v17 = vmul.f32 %v4277_v31, %v2378_v15  ;;  %v2068_v63 = vsub.f32 %v4093_v54, %v4286_v20  ;;  %vm2163_vm4 = vweird.f32 %v4316_v45 }
 0x282   : > { %v2049_v30 = vsub.f32 %v2017_v21, %v2033_v5  ;;  %v2310_v11 = vmul.f32 %v4249_v44, %v2273_v19  ;;  %v2311_v16 = vmul.f32 %v4251_v4, %v2274_v55 }
 0x283   : > { %v2151_v28 = vsub.f32 1.5, %v2150_v56  ;;  %v2449_v39 = vadd.f32 %v2416_v17, %v2415_v10 }
 0x284   : > { %v2840_v59 = vpop.eup %2839  ;;  %v4338_v58 = vadd.f32 1e-05, %v2049_v30  ;;  %v2347_v41 = vadd.f32 %v4259_v18, %v2310_v11  ;;  %v2348_v51 = vadd.f32 %v4261_v49, %v2311_v16 }
 0x285   : > { %v2152_v37 = vmul.f32 %v2838_v0, %v2151_v28  ;;  %v2158_v25 = vmul.f32 %v2840_v59, %v4316_v45  ;;  %2450 = vadd.xlane.f32.xlu0 %v2449_v39  ;;  %v1986_v36 = vpop.xlane.xlu1 %1985  ;;  %v1890_v40 = vpop.xlane.xlu0 %1889  ;;  %vm2164_vm3 = vweird.f32 %v2840_v59 }
 0x286   : > { %2841 = vrsqrt.f32 %v4338_v58  ;;  %v4351_v32 = vmul.f32 %v1890_v40, %v3646_v57  ;;  %v2379_v47 = vmax.f32 %v2347_v41, 0.0  ;;  %v2380_v48 = vmax.f32 %v2348_v51, 0.0  ;;  %vm2165_vm5 = vmor %vm2163_vm4, %vm2164_vm3 }
 0x287   : > { %v2156_v1 = vsel %vm2155_vm2, %v2838_v0, %v2152_v37  ;;  %v2159_v13 = vmul.f32 %v2840_v59, %v2158_v25  ;;  %v2018_v21 = vmul.f32 %v1986_v36, %v3646_v57  ;;  %v2069_v36 = vsub.f32 %v4102_v33, %v4307_v42 }
 0x288   : > { %v2275_v15 = vmul.f32 %v2156_v1, %v2067_v6  ;;  %v2276_v5 = vmul.f32 %v2156_v1, %v2068_v63  ;;  %v2034_v26 = vmul.f32 %v4351_v32, %v4351_v32  ;;  %v2417_v54 = vmul.f32 %v4271_v43, %v2379_v47 }
 0x289   : > { %v2160_v19 = vmul.f32 0.5, %v2159_v13  ;;  %v2418_v20 = vmul.f32 %v4277_v31, %v2380_v48  ;;  %v2070_v40 = vsub.f32 %v4105_v14, %v4307_v42  ;;  %vm2173_vm7 = vweird.f32 %v4338_v58 }
 0x28a   : > { %v2050_v56 = vsub.f32 %v2018_v21, %v2034_v26  ;;  %v2312_v10 = vmul.f32 %v4249_v44, %v2275_v15  ;;  %v2313_v0 = vmul.f32 %v4251_v4, %v2276_v5 }
 0x28b   : > { %v2161_v17 = vsub.f32 1.5, %v2160_v19  ;;  %v2452_v55 = vadd.f32 %v2418_v20, %v2417_v54 }
 0x28c   : > { %v2842_v30 = vpop.eup %2841  ;;  %v4360_v11 = vadd.f32 1e-05, %v2050_v56  ;;  %v2349_v28 = vadd.f32 %v4259_v18, %v2312_v10  ;;  %v2350_v39 = vadd.f32 %v4261_v49, %v2313_v0 }
 0x28d   : > { %v2162_v16 = vmul.f32 %v2840_v59, %v2161_v17  ;;  %v2168_v41 = vmul.f32 %v2842_v30, %v4338_v58  ;;  %2453 = vadd.xlane.f32.xlu1 %v2452_v55  ;;  %v1989_v37 = vpop.xlane.xlu2 %1988  ;;  %v1893_v25 = vpop.xlane.xlu1 %1892  ;;  %vm2174_vm6 = vweird.f32 %v2842_v30 }
 0x28e   : > { %2843 = vrsqrt.f32 %v4360_v11  ;;  %v4372_v51 = vmul.f32 %v1893_v25, %v3646_v57  ;;  %v2381_v45 = vmax.f32 %v2349_v28, 0.0  ;;  %v2382_v1 = vmax.f32 %v2350_v39, 0.0  ;;  %vm2175_vm8 = vmor %vm2173_vm7, %vm2174_vm6 }
 0x28f   : > { %v2166_v6 = vsel %vm2165_vm5, %v2840_v59, %v2162_v16  ;;  %v2169_v63 = vmul.f32 %v2842_v30, %v2168_v41  ;;  %v2019_v48 = vmul.f32 %v1989_v37, %v3646_v57  ;;  %v2071_v39 = vsub.f32 %v4114_v34, %v4329_v23 }
 0x290   : > { %v2277_v13 = vmul.f32 %v2166_v6, %v2069_v36  ;;  %v2278_v47 = vmul.f32 %v2166_v6, %v2070_v40  ;;  %v2035_v33 = vmul.f32 %v4372_v51, %v4372_v51  ;;  %v2419_v14 = vmul.f32 %v4271_v43, %v2381_v45 }
 0x291   : > { %v2170_v15 = vmul.f32 0.5, %v2169_v63  ;;  %v2420_v42 = vmul.f32 %v4277_v31, %v2382_v1  ;;  %v2072_v16 = vsub.f32 %v4117_v24, %v4329_v23  ;;  %vm2183_vm10 = vweird.f32 %v4360_v11 }
 0x292   : > { %v2051_v5 = vsub.f32 %v2019_v48, %v2035_v33  ;;  %v2314_v21 = vmul.f32 %v4249_v44, %v2277_v13  ;;  %v2315_v59 = vmul.f32 %v4251_v4, %v2278_v47 }
 0x293   : > { %v2171_v26 = vsub.f32 1.5, %v2170_v15  ;;  %v2455_v19 = vadd.f32 %v2420_v42, %v2419_v14 }
 0x294   : > { %v2844_v54 = vpop.eup %2843  ;;  %v4381_v20 = vadd.f32 1e-05, %v2051_v5  ;;  %v2351_v56 = vadd.f32 %v4259_v18, %v2314_v21  ;;  %v2352_v10 = vadd.f32 %v4261_v49, %v2315_v59 }
 0x295   : > { %v2172_v0 = vmul.f32 %v2842_v30, %v2171_v26  ;;  %v2178_v17 = vmul.f32 %v2844_v54, %v4360_v11  ;;  %2456 = vadd.xlane.f32.xlu2 %v2455_v19  ;;  %v1896_v55 = vpop.xlane.xlu2 %1895  ;;  %v1992_v28 = vpop.xlane.xlu0 %1991  ;;  %vm2184_vm9 = vweird.f32 %v2844_v54  ;;  %v2073_v19 = vsub.f32 %v4126_v61, %v4351_v32 }
 0x296   : > { %2845 = vrsqrt.f32 %v4381_v20  ;;  %v4393_v41 = vmul.f32 %v1896_v55, %v3646_v57  ;;  %v2383_v58 = vmax.f32 %v2351_v56, 0.0  ;;  %v2384_v36 = vmax.f32 %v2352_v10, 0.0  ;;  %vm2185_vm11 = vmor %vm2183_vm10, %vm2184_vm9 }
 0x297   : > { %v2176_v37 = vsel %vm2175_vm8, %v2842_v30, %v2172_v0  ;;  %v2179_v25 = vmul.f32 %v2844_v54, %v2178_v17  ;;  %v2020_v6 = vmul.f32 %v1992_v28, %v3646_v57  ;;  %v2074_v56 = vsub.f32 %v4129_v2, %v4351_v32 }
 0x298   : > { %v2036_v40 = vmul.f32 %v4393_v41, %v4393_v41  ;;  %v2279_v63 = vmul.f32 %v2176_v37, %v2071_v39  ;;  %v2421_v45 = vmul.f32 %v4271_v43, %v2383_v58  ;;  %v2422_v24 = vmul.f32 %v4277_v31, %v2384_v36 }
 0x299   : > { %v2180_v34 = vmul.f32 0.5, %v2179_v25  ;;  %v2280_v23 = vmul.f32 %v2176_v37, %v2072_v16  ;;  %vm2193_vm13 = vweird.f32 %v4381_v20 }
 0x29a   : > { %v2052_v1 = vsub.f32 %v2020_v6, %v2036_v40  ;;  %v2316_v13 = vmul.f32 %v4249_v44, %v2279_v63  ;;  %v2458_v30 = vadd.f32 %v2422_v24, %v2421_v45 }
 0x29b   : > { %v2181_v47 = vsub.f32 1.5, %v2180_v34  ;;  %v2317_v48 = vmul.f32 %v4251_v4, %v2280_v23 }
 0x29c   : > { %v2846_v33 = vpop.eup %2845  ;;  %v4402_v15 = vadd.f32 1e-05, %v2052_v1  ;;  %v2353_v14 = vadd.f32 %v4259_v18, %v2316_v13  ;;  %2459 = vadd.xlane.f32.xlu0 %v2458_v30  ;;  %v2076_v30 = vsub.f32 %v4141_v52, %v4372_v51 }
 0x29d   : > { %v2182_v42 = vmul.f32 %v2844_v54, %v2181_v47  ;;  %v2188_v5 = vmul.f32 %v2846_v33, %v4381_v20  ;;  %v1995_v21 = vpop.xlane.xlu1 %1994  ;;  %v1899_v59 = vpop.xlane.xlu0 %1898  ;;  %v2354_v26 = vadd.f32 %v4261_v49, %v2317_v48  ;;  %vm2194_vm12 = vweird.f32 %v2846_v33 }
 0x29e   : > { %2847 = vrsqrt.f32 %v4402_v15  ;;  %v4415_v10 = vmul.f32 %v1899_v59, %v3646_v57  ;;  %v2385_v17 = vmax.f32 %v2353_v14, 0.0  ;;  %v2021_v16 = vmul.f32 %v1995_v21, %v3646_v57  ;;  %vm2195_vm14 = vmor %vm2193_vm13, %vm2194_vm12 }
 0x29f   : > { %v2186_v11 = vsel %vm2185_vm11, %v2844_v54, %v2182_v42  ;;  %v2189_v0 = vmul.f32 %v2846_v33, %v2188_v5  ;;  %v2386_v55 = vmax.f32 %v2354_v26, 0.0  ;;  %v2075_v47 = vsub.f32 %v4138_v29, %v4372_v51 }
 0x2a0   : > { %v2281_v28 = vmul.f32 %v2186_v11, %v2073_v19  ;;  %v2282_v39 = vmul.f32 %v2186_v11, %v2074_v56  ;;  %v2037_v61 = vmul.f32 %v4415_v10, %v4415_v10  ;;  %v2423_v2 = vmul.f32 %v4271_v43, %v2385_v17 }
 0x2a1   : > { %v2190_v37 = vmul.f32 0.5, %v2189_v0  ;;  %v2424_v32 = vmul.f32 %v4277_v31, %v2386_v55  ;;  %vm2203_vm0 = vweird.f32 %v4402_v15 }
 0x2a2   : > { %v2053_v25 = vsub.f32 %v2021_v16, %v2037_v61  ;;  %v2318_v58 = vmul.f32 %v4249_v44, %v2281_v28  ;;  %v2319_v54 = vmul.f32 %v4251_v4, %v2282_v39 }
 0x2a3   : > { %v2191_v36 = vsub.f32 1.5, %v2190_v37  ;;  %v2461_v40 = vadd.f32 %v2424_v32, %v2423_v2 }
 0x2a4   : > { %v2848_v6 = vpop.eup %2847  ;;  %v4424_v63 = vadd.f32 1e-05, %v2053_v25  ;;  %v2355_v34 = vadd.f32 %v4259_v18, %v2318_v58  ;;  %v2356_v45 = vadd.f32 %v4261_v49, %v2319_v54  ;;  %v2077_v25 = vsub.f32 %v4150_v38, %v4393_v41 }
 0x2a5   : > { %v2192_v24 = vmul.f32 %v2846_v33, %v2191_v36  ;;  %v2198_v23 = vmul.f32 %v2848_v6, %v4402_v15  ;;  %2462 = vadd.xlane.f32.xlu1 %v2461_v40  ;;  %v1998_v1 = vpop.xlane.xlu2 %1997  ;;  %v1902_v13 = vpop.xlane.xlu1 %1901  ;;  %vm2204_vm15 = vweird.f32 %v2848_v6  ;;  %v2078_v58 = vsub.f32 %v4153_v3, %v4393_v41 }
 0x2a6   : > { %2849 = vrsqrt.f32 %v4424_v63  ;;  %v4436_v48 = vmul.f32 %v1902_v13, %v3646_v57  ;;  %v2387_v20 = vmax.f32 %v2355_v34, 0.0  ;;  %v2388_v5 = vmax.f32 %v2356_v45, 0.0  ;;  %vm2205_vm1 = vmor %vm2203_vm0, %vm2204_vm15 }
 0x2a7   : > { %v2196_v14 = vsel %vm2195_vm14, %v2846_v33, %v2192_v24  ;;  %v2199_v42 = vmul.f32 %v2848_v6, %v2198_v23  ;;  %v2022_v26 = vmul.f32 %v1998_v1, %v3646_v57  ;;  %vm2213_vm3 = vweird.f32 %v4424_v63 }
 0x2a8   : > { %v2283_v21 = vmul.f32 %v2196_v14, %v2075_v47  ;;  %v2284_v59 = vmul.f32 %v2196_v14, %v2076_v30  ;;  %v2038_v29 = vmul.f32 %v4436_v48, %v4436_v48  ;;  %v2425_v52 = vmul.f32 %v4271_v43, %v2387_v20 }
 0x2a9   : > { %v2200_v19 = vmul.f32 0.5, %v2199_v42  ;;  %v2426_v51 = vmul.f32 %v4277_v31, %v2388_v5 }
 0x2aa   : > { %v2054_v56 = vsub.f32 %v2022_v26, %v2038_v29  ;;  %v2320_v11 = vmul.f32 %v4249_v44, %v2283_v21  ;;  %v2321_v33 = vmul.f32 %v4251_v4, %v2284_v59  ;;  %v2079_v29 = vsub.f32 %v4162_v35, %v4415_v10 }
 0x2ab   : > { %v2201_v0 = vsub.f32 1.5, %v2200_v19  ;;  %v2464_v17 = vadd.f32 %v2426_v51, %v2425_v52  ;;  %v2080_v19 = vsub.f32 %v4165_v46, %v4415_v10 }
 0x2ac   : > { %v2850_v55 = vpop.eup %2849  ;;  %v4445_v28 = vadd.f32 1e-05, %v2054_v56  ;;  %v2357_v39 = vadd.f32 %v4259_v18, %v2320_v11  ;;  %v2358_v16 = vadd.f32 %v4261_v49, %v2321_v33 }
 0x2ad   : > { %v2202_v61 = vmul.f32 %v2848_v6, %v2201_v0  ;;  %v2208_v37 = vmul.f32 %v2850_v55, %v4424_v63  ;;  %2465 = vadd.xlane.f32.xlu2 %v2464_v17  ;;  %v1905_v2 = vpop.xlane.xlu2 %1904  ;;  %v2001_v32 = vpop.xlane.xlu0 %2000  ;;  %vm2214_vm2 = vweird.f32 %v2850_v55 }
 0x2ae   : > { %2851 = vrsqrt.f32 %v4445_v28  ;;  %v4457_v54 = vmul.f32 %v1905_v2, %v3646_v57  ;;  %v2389_v15 = vmax.f32 %v2357_v39, 0.0  ;;  %v2390_v34 = vmax.f32 %v2358_v16, 0.0  ;;  %vm2215_vm4 = vmor %vm2213_vm3, %vm2214_vm2 }
 0x2af   : > { %v2206_v36 = vsel %vm2205_vm1, %v2848_v6, %v2202_v61  ;;  %v2209_v40 = vmul.f32 %v2850_v55, %v2208_v37  ;;  %v2023_v24 = vmul.f32 %v2001_v32, %v3646_v57  ;;  %vm2223_vm6 = vweird.f32 %v4445_v28 }
 0x2b0   : > { %v2039_v45 = vmul.f32 %v4457_v54, %v4457_v54  ;;  %v2285_v23 = vmul.f32 %v2206_v36, %v2077_v25  ;;  %v2427_v1 = vmul.f32 %v4271_v43, %v2389_v15  ;;  %v2428_v3 = vmul.f32 %v4277_v31, %v2390_v34 }
 0x2b1   : > { %v2210_v38 = vmul.f32 0.5, %v2209_v40  ;;  %v2286_v41 = vmul.f32 %v2206_v36, %v2078_v58  ;;  %v2081_v36 = vsub.f32 %v4174_v60, %v4436_v48  ;;  %v2082_v40 = vsub.f32 %v4177_v7, %v4436_v48 }
 0x2b2   : > { %v2055_v13 = vsub.f32 %v2023_v24, %v2039_v45  ;;  %v2322_v47 = vmul.f32 %v4249_v44, %v2285_v23  ;;  %v2467_v6 = vadd.f32 %v2428_v3, %v2427_v1 }
 0x2b3   : > { %v2211_v30 = vsub.f32 1.5, %v2210_v38  ;;  %v2323_v14 = vmul.f32 %v4251_v4, %v2286_v41 }
 0x2b4   : > { %v2852_v42 = vpop.eup %2851  ;;  %v2103_v20 = vadd.f32 1e-05, %v2055_v13  ;;  %v2359_v5 = vadd.f32 %v4259_v18, %v2322_v47  ;;  %2468 = vadd.xlane.f32.xlu0 %v2467_v6 }
 0x2b5   : > { %v2212_v21 = vmul.f32 %v2850_v55, %v2211_v30  ;;  %v2218_v59 = vmul.f32 %v2852_v42, %v4445_v28  ;;  %v2360_v26 = vadd.f32 %v4261_v49, %v2323_v14  ;;  %vm2224_vm5 = vweird.f32 %v2852_v42  ;;  %v1908_v2 = vpop.xlane.xlu0 %1907 }
 0x2b6   : > { %2853 = vrsqrt.f32 %v2103_v20  ;;  %v2391_v52 = vmax.f32 %v2359_v5, 0.0  ;;  %vm2225_vm7 = vmor %vm2223_vm6, %vm2224_vm5  ;;  %v4486_v23 = vmul.f32 %v1908_v2, %v3646_v57  ;;  %vm2233_vm9 = vweird.f32 %v2103_v20 }
 0x2b7   : > { %v2216_v51 = vsel %vm2215_vm4, %v2850_v55, %v2212_v21  ;;  %v2219_v56 = vmul.f32 %v2852_v42, %v2218_v59  ;;  %v2392_v11 = vmax.f32 %v2360_v26, 0.0  ;;  %vm2509_vm4 = vcmask 7168  }
 0x2b8   : > { %v2287_v33 = vmul.f32 %v2216_v51, %v2079_v29  ;;  %v2288_v0 = vmul.f32 %v2216_v51, %v2080_v19  ;;  %v2429_v17 = vmul.f32 %v4271_v43, %v2391_v52  ;;  %v2040_v6 = vmul.f32 %v4486_v23, %v4486_v23 }
 0x2b9   : > { %v2220_v63 = vmul.f32 0.5, %v2219_v56  ;;  %v2430_v39 = vmul.f32 %v4277_v31, %v2392_v11  ;;  %v2083_v51 = vsub.f32 %v4186_v53, %v4457_v54  ;;  %v2084_v56 = vsub.f32 %v4189_v12, %v4457_v54 }
 0x2ba   : > { %v2324_v16 = vmul.f32 %v4249_v44, %v2287_v33  ;;  %v2325_v35 = vmul.f32 %v4251_v4, %v2288_v0 }
 0x2bb   : > { %v2221_v61 = vsub.f32 1.5, %v2220_v63  ;;  %v1911_v46 = vpop.xlane.xlu1 %1910  ;;  %v2470_v10 = vadd.f32 %v2430_v39, %v2429_v17 }
 0x2bc   : > { %v2854_v37 = vpop.eup %2853  ;;  %v2361_v55 = vadd.f32 %v4259_v18, %v2324_v16  ;;  %v2362_v32 = vadd.f32 %v4261_v49, %v2325_v35  ;;  %v4510_v39 = vmul.f32 %v1911_v46, %v3646_v57 }
 0x2bd   : > { %v2222_v25 = vmul.f32 %v2852_v42, %v2221_v61  ;;  %v2228_v58 = vmul.f32 %v2854_v37, %v2103_v20  ;;  %2471 = vadd.xlane.f32.xlu1 %v2470_v10  ;;  %vm2234_vm8 = vweird.f32 %v2854_v37 }
 0x2be   : > { %v2393_v15 = vmax.f32 %v2361_v55, 0.0  ;;  %v2394_v34 = vmax.f32 %v2362_v32, 0.0  ;;  %vm2235_vm10 = vmor %vm2233_vm9, %vm2234_vm8  ;;  %v2041_v2 = vmul.f32 %v4510_v39, %v4510_v39 }
 0x2bf   : > { %v2226_v45 = vsel %vm2225_vm7, %v2852_v42, %v2222_v25  ;;  %v2229_v24 = vmul.f32 %v2854_v37, %v2228_v58 }
 0x2c0   : > { %v2289_v38 = vmul.f32 %v2226_v45, %v2081_v36  ;;  %v2290_v1 = vmul.f32 %v2226_v45, %v2082_v40  ;;  %v2431_v28 = vmul.f32 %v4271_v43, %v2393_v15  ;;  %v2432_v3 = vmul.f32 %v4277_v31, %v2394_v34 }
 0x2c1   : > { %v2230_v41 = vmul.f32 0.5, %v2229_v24 }
 0x2c2   : > { %v2473_v13 = vadd.f32 %v2432_v3, %v2431_v28  ;;  %v2326_v60 = vmul.f32 %v4249_v44, %v2289_v38  ;;  %v2327_v7 = vmul.f32 %v4251_v4, %v2290_v1 }
 0x2c3   : > { %v2231_v48 = vsub.f32 1.5, %v2230_v41  ;;  %v2004_v47 = vpop.xlane.xlu1 %2003  ;;  %v1914_v14 = vpop.xlane.xlu2 %1913 }
 0x2c4   : > { %v2024_v30 = vmul.f32 %v2004_v47, %v3646_v57  ;;  %2474 = vadd.xlane.f32.xlu2 %v2473_v13  ;;  %v2363_v42 = vadd.f32 %v4259_v18, %v2326_v60  ;;  %v2364_v5 = vadd.f32 %v4261_v49, %v2327_v7  ;;  %v4498_v59 = vmul.f32 %v1914_v14, %v3646_v57 }
 0x2c5   : > { %v2232_v21 = vmul.f32 %v2854_v37, %v2231_v48  ;;  %v2010_v29 = vpop.xlane.xlu0 %2009  ;;  %v2085_v47 = vsub.f32 %v4201_v62, %v4486_v23 }
 0x2c6   : > { %v2056_v26 = vsub.f32 %v2024_v30, %v2040_v6  ;;  %v2395_v19 = vmax.f32 %v2363_v42, 0.0  ;;  %v2396_v52 = vmax.f32 %v2364_v5, 0.0  ;;  %v2042_v33 = vmul.f32 %v4498_v59, %v4498_v59 }
 0x2c7   : > { %v2236_v11 = vsel %vm2235_vm10, %v2854_v37, %v2232_v21  ;;  %v2026_v20 = vmul.f32 %v2010_v29, %v3646_v57  ;;  %v2086_v30 = vsub.f32 %v4199_v50, %v4486_v23  ;;  %v2090_v23 = vsub.f32 %v4219_v8, %v4498_v59 }
 0x2c8   : > { %v2104_v0 = vadd.f32 1e-05, %v2056_v26  ;;  %v2433_v63 = vmul.f32 %v4271_v43, %v2395_v19  ;;  %v2434_v17 = vmul.f32 %v4277_v31, %v2396_v52  ;;  %v2291_v16 = vmul.f32 %v2236_v11, %v2083_v51 }
 0x2c9   : > { %v2292_v35 = vmul.f32 %v2236_v11, %v2084_v56  ;;  %v2058_v53 = vsub.f32 %v2026_v20, %v2042_v33  ;;  %v2089_v19 = vsub.f32 %v4217_v22, %v4498_v59  ;;  %v2088_v8 = vsub.f32 %v4209_v27, %v4510_v39 }
 0x2ca   : > { %2855 = vrsqrt.f32 %v2104_v0  ;;  %v2476_v61 = vadd.f32 %v2434_v17, %v2433_v63  ;;  %v2328_v12 = vmul.f32 %v4249_v44, %v2291_v16  ;;  %vm2243_vm12 = vweird.f32 %v2104_v0 }
 0x2cb   : > { %v2329_v54 = vmul.f32 %v4251_v4, %v2292_v35  ;;  %v2106_v10 = vadd.f32 1e-05, %v2058_v53  ;;  %v2007_v37 = vpop.xlane.xlu2 %2006  ;;  %v2087_v35 = vsub.f32 %v4207_v9, %v4510_v39 }
 0x2cc   : > { %2477 = vadd.xlane.f32.xlu0 %v2476_v61  ;;  %v2025_v55 = vmul.f32 %v2007_v37, %v3646_v57  ;;  %v2365_v46 = vadd.f32 %v4259_v18, %v2328_v12 }
 0x2cd   : > { %v2366_v32 = vadd.f32 %v4261_v49, %v2329_v54  ;;  %2857 = vrsqrt.f32 %v2106_v10  ;;  %vm2263_vm15 = vweird.f32 %v2106_v10 }
 0x2ce   : > { %v2057_v25 = vsub.f32 %v2025_v55, %v2041_v2  ;;  %v2397_v58 = vmax.f32 %v2365_v46, 0.0  ;;  %v4543_v55 = vstv %s2491_s25 }
 0x2cf   : > { %v2398_v36 = vmax.f32 %v2366_v32, 0.0 }
 0x2d0   : > { %v2856_v40 = vpop.eup %2855  ;;  %v2105_v34 = vadd.f32 1e-05, %v2057_v25  ;;  %v2435_v45 = vmul.f32 %v4271_v43, %v2397_v58 }
 0x2d1   : > { %v2238_v15 = vmul.f32 %v2856_v40, %v2104_v0  ;;  %v2436_v24 = vmul.f32 %v4277_v31, %v2398_v36  ;;  %vm2244_vm11 = vweird.f32 %v2856_v40 }
 0x2d2   : > { %2859 = vrsqrt.f32 %v2105_v34  ;;  %vm2245_vm13 = vmor %vm2243_vm12, %vm2244_vm11  ;;  %vm2253_vm2 = vweird.f32 %v2105_v34 }
 0x2d3   : > { %v2239_v38 = vmul.f32 %v2856_v40, %v2238_v15  ;;  %v2858_v1 = vpop.eup %2857  ;;  %v2479_v28 = vadd.f32 %v2436_v24, %v2435_v45 }
 0x2d4   : > { %v2258_v3 = vmul.f32 %v2858_v1, %v2106_v10  ;;  %vm2264_vm14 = vweird.f32 %v2858_v1 }
 0x2d5   : > { %v2240_v57 = vmul.f32 0.5, %v2239_v38  ;;  %2480 = vadd.xlane.f32.xlu1 %v2479_v28  ;;  %vm2265_vm0 = vmor %vm2263_vm15, %vm2264_vm14 }
 0x2d6   : > { %v2259_v13 = vmul.f32 %v2858_v1, %v2258_v3 }
 0x2d7   : > { %v2241_v41 = vsub.f32 1.5, %v2240_v57 }
 0x2d8   : > { %v2860_v60 = vpop.eup %2859  ;;  %v2260_v48 = vmul.f32 0.5, %v2259_v13 }
 0x2d9   : > { %v2242_v7 = vmul.f32 %v2856_v40, %v2241_v41  ;;  %v2248_v6 = vmul.f32 %v2860_v60, %v2105_v34  ;;  %vm2254_vm1 = vweird.f32 %v2860_v60 }
 0x2da   : > { %v2261_v42 = vsub.f32 1.5, %v2260_v48  ;;  %vm2255_vm3 = vmor %vm2253_vm2, %vm2254_vm1 }
 0x2db   : > { %v2246_v14 = vsel %vm2245_vm13, %v2856_v40, %v2242_v7  ;;  %v2249_v5 = vmul.f32 %v2860_v60, %v2248_v6 }
 0x2dc   : > { %v2293_v21 = vmul.f32 %v2246_v14, %v2085_v47  ;;  %v2294_v26 = vmul.f32 %v2246_v14, %v2086_v30  ;;  %v2262_v29 = vmul.f32 %v2858_v1, %v2261_v42 }
 0x2dd   : > { %v2250_v52 = vmul.f32 0.5, %v2249_v5 }
 0x2de   : > { %v2330_v62 = vmul.f32 %v4249_v44, %v2293_v21  ;;  %v2331_v50 = vmul.f32 %v4251_v4, %v2294_v26  ;;  %v2266_v51 = vsel %vm2265_vm0, %v2858_v1, %v2262_v29 }
 0x2df   : > { %v2251_v56 = vsub.f32 1.5, %v2250_v52  ;;  %v2297_v0 = vmul.f32 %v2266_v51, %v2089_v19  ;;  %v2298_v22 = vmul.f32 %v2266_v51, %v2090_v23 }
 0x2e0   : > { %v2367_v11 = vadd.f32 %v4259_v18, %v2330_v62  ;;  %v2368_v33 = vadd.f32 %v4261_v49, %v2331_v50 }
 0x2e1   : > { %v2252_v20 = vmul.f32 %v2860_v60, %v2251_v56  ;;  %v2334_v16 = vmul.f32 %v4249_v44, %v2297_v0  ;;  %v2335_v59 = vmul.f32 %v4251_v4, %v2298_v22 }
 0x2e2   : > { %v2399_v63 = vmax.f32 %v2367_v11, 0.0  ;;  %v2400_v17 = vmax.f32 %v2368_v33, 0.0 }
 0x2e3   : > { %v2256_v53 = vsel %vm2255_vm3, %v2860_v60, %v2252_v20  ;;  %v2371_v54 = vadd.f32 %v4259_v18, %v2334_v16  ;;  %v2372_v10 = vadd.f32 %v4261_v49, %v2335_v59 }
 0x2e4   : > { %v2437_v61 = vmul.f32 %v4271_v43, %v2399_v63  ;;  %v2438_v12 = vmul.f32 %v4277_v31, %v2400_v17  ;;  %v2295_v37 = vmul.f32 %v2256_v53, %v2087_v35  ;;  %v2296_v2 = vmul.f32 %v2256_v53, %v2088_v8 }
 0x2e5   : > { %v2403_v46 = vmax.f32 %v2371_v54, 0.0  ;;  %v2404_v27 = vmax.f32 %v2372_v10, 0.0 }
 0x2e6   : > { %v2482_v9 = vadd.f32 %v2438_v12, %v2437_v61  ;;  %v2332_v39 = vmul.f32 %v4249_v44, %v2295_v37  ;;  %v2333_v32 = vmul.f32 %v4251_v4, %v2296_v2  ;;  %v2445_v25 = vpop.xlane.xlu1 %2444 }
 0x2e7   : > { %v2441_v58 = vmul.f32 %v4271_v43, %v2403_v46  ;;  %v2493_v36 = vadd.f32 %v4543_v55, %v2445_v25  ;;  %v2442_v40 = vmul.f32 %v4277_v31, %v2404_v27 }
 0x2e8   : > { %2483 = vadd.xlane.f32.xlu2 %v2482_v9  ;;  %v2369_v44 = vadd.f32 %v4259_v18, %v2332_v39  ;;  %v2370_v4 = vadd.f32 %v4261_v49, %v2333_v32 }
 0x2e9   : > { %2510 = vst.msk [vmem:[%s4551_s3] sm:$0xff] %vm2509_vm4, %v2493_v36  ;;  %v2488_v15 = vadd.f32 %v2442_v40, %v2441_v58 }
 0x2ea   : > { %v2401_v34 = vmax.f32 %v2369_v44, 0.0  ;;  %v2402_v45 = vmax.f32 %v2370_v4, 0.0 }
 0x2eb   : > { %2489 = vadd.xlane.f32.xlu1 %v2488_v15 }
 0x2ec   : > { %v2439_v24 = vmul.f32 %v4271_v43, %v2401_v34  ;;  %v2440_v38 = vmul.f32 %v4277_v31, %v2402_v45 }
 0x2ee   : > { %v2485_v1 = vadd.f32 %v2440_v38, %v2439_v24 }
 0x2ef   : > { %v2448_v28 = vpop.xlane.xlu2 %2447 }
 0x2f0   : > { %v2494_v18 = vadd.f32 %v4543_v55, %v2448_v28  ;;  %2486 = vadd.xlane.f32.xlu0 %v2485_v1 }
 0x2f2   : > { %2511 = vst.msk [vmem:[%s4551_s3 + $0x8] sm:$0xff] %vm2509_vm4, %v2494_v18 }
 0x2f8   : > { %v2451_v49 = vpop.xlane.xlu0 %2450 }
 0x2f9   : > { %v2495_v57 = vadd.f32 %v4543_v55, %v2451_v49 }
 0x2fb   : > { %2512 = vst.msk [vmem:[%s4551_s3 + $0x10] sm:$0xff] %vm2509_vm4, %v2495_v57 }
 0x300   : > { %v2454_v3 = vpop.xlane.xlu1 %2453 }
 0x301   : > { %v2496_v43 = vadd.f32 %v4543_v55, %v2454_v3 }
 0x303   : > { %2513 = vst.msk [vmem:[%s4551_s3 + $0x18] sm:$0xff] %vm2509_vm4, %v2496_v43 }
 0x308   : > { %v2457_v31 = vpop.xlane.xlu2 %2456 }
 0x309   : > { %v2497_v41 = vadd.f32 %v4543_v55, %v2457_v31 }
 0x30b   : > { %2514 = vst.msk [vmem:[%s4551_s3 + $0x20] sm:$0xff] %vm2509_vm4, %v2497_v41 }
 0x30f   : > { %v2460_v13 = vpop.xlane.xlu0 %2459 }
 0x310   : > { %v2498_v60 = vadd.f32 %v4543_v55, %v2460_v13 }
 0x312   : > { %2515 = vst.msk [vmem:[%s4551_s3 + $0x28] sm:$0xff] %vm2509_vm4, %v2498_v60 }
 0x318   : > { %v2463_v7 = vpop.xlane.xlu1 %2462 }
 0x319   : > { %v2499_v48 = vadd.f32 %v4543_v55, %v2463_v7 }
 0x31b   : > { %2516 = vst.msk [vmem:[%s4551_s3 + $0x30] sm:$0xff] %vm2509_vm4, %v2499_v48 }
 0x320   : > { %v2466_v47 = vpop.xlane.xlu2 %2465 }
 0x321   : > { %v2500_v30 = vadd.f32 %v4543_v55, %v2466_v47 }
 0x323   : > { %2517 = vst.msk [vmem:[%s4551_s3 + $0x38] sm:$0xff] %vm2509_vm4, %v2500_v30 }
 0x327   : > { %v2469_v6 = vpop.xlane.xlu0 %2468 }
 0x328   : > { %v2501_v14 = vadd.f32 %v4543_v55, %v2469_v6 }
 0x32a   : > { %2518 = vst.msk [vmem:[%s4551_s3 + $0x40] sm:$0xff] %vm2509_vm4, %v2501_v14 }
 0x330   : > { %v2472_v42 = vpop.xlane.xlu1 %2471 }
 0x331   : > { %v2502_v5 = vadd.f32 %v4543_v55, %v2472_v42 }
 0x333   : > { %2519 = vst.msk [vmem:[%s4551_s3 + $0x48] sm:$0xff] %vm2509_vm4, %v2502_v5 }
 0x337   : > { %v2475_v21 = vpop.xlane.xlu2 %2474 }
 0x338   : > { %v2503_v26 = vadd.f32 %v4543_v55, %v2475_v21 }
 0x33a   : > { %2520 = vst.msk [vmem:[%s4551_s3 + $0x50] sm:$0xff] %vm2509_vm4, %v2503_v26 }
 0x33f   : > { %v2478_v29 = vpop.xlane.xlu0 %2477 }
 0x340   : > { %v2504_v19 = vadd.f32 %v4543_v55, %v2478_v29 }
 0x342   : > { %2521 = vst.msk [vmem:[%s4551_s3 + $0x58] sm:$0xff] %vm2509_vm4, %v2504_v19 }
 0x348   : > { %v2481_v52 = vpop.xlane.xlu1 %2480 }
 0x349   : > { %v2505_v62 = vadd.f32 %v4543_v55, %v2481_v52 }
 0x34b   : > { %2522 = vst.msk [vmem:[%s4551_s3 + $0x60] sm:$0xff] %vm2509_vm4, %v2505_v62 }
 0x35b   : > { %v2484_v50 = vpop.xlane.xlu2 %2483 }
 0x35c   : > { %v2506_v23 = vadd.f32 %v4543_v55, %v2484_v50 }
 0x35e   : > { %2523 = vst.msk [vmem:[%s4551_s3 + $0x68] sm:$0xff] %vm2509_vm4, %v2506_v23  ;;  %v2490_v51 = vpop.xlane.xlu1 %2489 }
 0x35f   : > { %v2508_v56 = vadd.f32 %v4543_v55, %v2490_v51 }
 0x361   : > { %2525 = vst.msk [vmem:[%s4551_s3 + $0x78] sm:$0xff] %vm2509_vm4, %v2508_v56 }
 0x363   : > { %v2487_v11 = vpop.xlane.xlu0 %2486 }
 0x364   : > { %v2507_v33 = vadd.f32 %v4543_v55, %v2487_v11 }
 0x366   : > { %2524 = vst.msk [vmem:[%s4551_s3 + $0x70] sm:$0xff] %vm2509_vm4, %v2507_v33 }
 0x367 PF: > { %s27_s27 = sadd.s32 1, %s3029_s27  }
 0x368   : > { %p24_p7 = scmp.ge.s32.totalorder %s27_s27, 4  }
 0x36a   :  { %26 = sbr.rel (!%p24_p7) target bundleno = 6 (0x6), region = 126 }
 0x36f   :  { %2548 = vsyncpa [#allocation4], 1 }
 0x370   :  { %2550 = vsyncpa [#allocation4 + $0x1], 1 }
 0x371   :  { %2551 = vsyncpa [#allocation6], 1 }
 0x372   :  { %2552 = vsyncpa [#allocation9], 1 }

</bundles_post_ra>
